<compile_context>
chip_gen: v5e
topology: v5e:2x2
jax: 0.10.0
libtpu: 0.0.40
codegen_flags: <defaults>
</compile_context>

<pallas_src>
import math
import functools

import jax
import jax.numpy as jnp
from jax import lax
from jax.experimental import pallas as pl
from jax.experimental.pallas import tpu as pltpu


# -----------------------------------------------------------------------------
# Recurrent Pallas kernel: one grid step == one (batch tile, time chunk).
# -----------------------------------------------------------------------------
def _slstm_recurrent_kernel(xp_ref, wh_ref,
                            h_seq_ref, c_seq_ref, n_seq_ref,
                            h_s, c_s, n_s, m_s,
                            *, hidden_size, t_chunk, unroll, approx_recip):
    # grid = (batch tiles, time chunks); time (axis 1) is the sequential axis.
    # Zero-init the carried state at the first time chunk of every batch tile
    # (PyTorch hidden_states=None).
    @pl.when(pl.program_id(1) == 0)
    def _():
        h_s[...] = jnp.zeros_like(h_s)
        c_s[...] = jnp.zeros_like(c_s)
        n_s[...] = jnp.zeros_like(n_s)
        m_s[...] = jnp.zeros_like(m_s)

    H = hidden_size

    def step(t, carry):
        h, c, n, m = carry

        # gates = (x_t @ Wx + B) + h @ Wh ; the x-projection was hoisted out, so only
        # the (tb, H) x (H, 4H) recurrent matmul sits on the serial critical path.
        # Wh is read from VMEM per step (not held as a loop-invariant vreg value).
        gates = xp_ref[t].astype(jnp.float32) + jnp.dot(
            h.astype(wh_ref.dtype), wh_ref[...],
            preferred_element_type=jnp.float32)

        # Lane-aligned slices for production H >= 128; sub-vreg selects at demo H=32.
        z_tilda = gates[:, 0 * H:1 * H]
        i_tilda = gates[:, 1 * H:2 * H]
        f_tilda = gates[:, 2 * H:3 * H]
        o_tilda = gates[:, 3 * H:4 * H]

        z_t = jnp.tanh(z_tilda)
        o_t = jax.nn.sigmoid(o_tilda)

        # log(sigmoid(f)) computed stably: logsigmoid(x) = min(x,0) - log(1+exp(-|x|))
        log_f = jnp.minimum(f_tilda, 0.0) - jnp.log(1.0 + jnp.exp(-jnp.abs(f_tilda)))
        f_t = jnp.exp(log_f)                      # == sigmoid(f_tilda)

        # m_t = max(log(f_t) + m, log(exp(i_tilda))) -> max(log_f + m, i_tilda)
        m_t = jnp.maximum(log_f + m, i_tilda)
        i_prime = jnp.exp(i_tilda - m_t)          # in (0, 1]

        c_t = f_t * c + i_prime * z_t
        n_t = f_t * n + i_prime
        if approx_recip:
            h_t = o_t * (c_t * pl.reciprocal(n_t, approx=True))   # EUP vrcp slot
        else:
            h_t = o_t * (c_t / n_t)

        # slab outputs for this chunk
        h_seq_ref[t] = h_t
        c_seq_ref[t] = c_t
        n_seq_ref[t] = n_t
        return (h_t, c_t, n_t, m_t)

    carry0 = (h_s[...], c_s[...], n_s[...], m_s[...])
    h, c, n, m = lax.fori_loop(0, t_chunk, step, carry0, unroll=unroll)

    # persist recurrence state for the next time chunk of this batch tile
    h_s[...] = h
    c_s[...] = c
    n_s[...] = n
    m_s[...] = m


def _pick_batch_tile(B, batch_tile):
    if batch_tile is not None:
        if B % batch_tile != 0:
            raise ValueError("batch_tile must divide the batch size")
        return batch_tile
    # Feed v7x's second TensorCore via a parallel batch axis when each tile keeps
    # a full multiple of 8 sublanes; otherwise one tile (no-op on v5e/v6e).
    if B % 16 == 0:
        return B // 2
    return B


# -----------------------------------------------------------------------------
# One sLSTM layer over a full sequence.
# -----------------------------------------------------------------------------
def slstm_layer(x_seq, Wx, Wh, bias, *, t_chunk=32, unroll=8,
                matmul_dtype=jnp.bfloat16, batch_tile=None):
    """x_seq: (T, B, D_in). Returns (h_seq, c_seq, n_seq), each (T, B, H) float32.

    matmul_dtype=jnp.bfloat16 runs the MXU matmuls (and the x_proj HBM stream) in
    bf16 while keeping all recurrence/elementwise math and carries in float32.
    matmul_dtype=None gives the bit-faithful f32 path (exact divide, f32 streams).
    """
    T, B, D_in = x_seq.shape
    H = Wh.shape[0]

    exact = matmul_dtype is None
    mm_dt = jnp.float32 if exact else matmul_dtype

    # (1) Hoisted input projection: one big, MXU-shaped matmul (no time dependence).
    x_proj = (jnp.dot(x_seq.reshape(T * B, D_in).astype(mm_dt), Wx.astype(mm_dt),
                      preferred_element_type=jnp.float32)
              + bias.astype(jnp.float32)[None, :]).reshape(T, B, 4 * H)
    # Store narrow in HBM (largest streamed operand makes a full HBM round trip);
    # widened back to f32 inside the kernel.
    x_proj = x_proj.astype(jnp.float32 if exact else jnp.bfloat16)

    # (2) Time-chunked grid. Pad T to a multiple of the chunk; padded tail steps are
    #     computed (cheap, NaN-free) and their outputs discarded.
    tc = max(1, min(t_chunk, T))
    T_pad = pl.cdiv(T, tc) * tc
    if T_pad != T:
        x_proj = jnp.pad(x_proj, ((0, T_pad - T), (0, 0), (0, 0)))

    tb = _pick_batch_tile(B, batch_tile)
    wh = Wh.astype(mm_dt)
    unroll_n = max(1, min(unroll, tc))

    kernel = functools.partial(_slstm_recurrent_kernel, hidden_size=H, t_chunk=tc,
                               unroll=unroll_n, approx_recip=not exact)

    out_shapes = tuple(jax.ShapeDtypeStruct((T_pad, B, H), jnp.float32)
                       for _ in range(3))

    grid_spec = pltpu.PrefetchScalarGridSpec(
        num_scalar_prefetch=0,
        grid=(B // tb, T_pad // tc),                              # (batch, time)
        in_specs=[
            pl.BlockSpec((tc, tb, 4 * H), lambda b, t: (t, b, 0)),  # x_proj chunk
            pl.BlockSpec((H, 4 * H), lambda b, t: (0, 0)),          # Wh (resident)
        ],
        out_specs=[
            pl.BlockSpec((tc, tb, H), lambda b, t: (t, b, 0)),      # h_seq chunk
            pl.BlockSpec((tc, tb, H), lambda b, t: (t, b, 0)),      # c_seq chunk
            pl.BlockSpec((tc, tb, H), lambda b, t: (t, b, 0)),      # n_seq chunk
        ],
        scratch_shapes=[pltpu.VMEM((tb, H), jnp.float32) for _ in range(4)],
    )

    # Explicit VMEM budget: double-buffered streams + resident Wh + state scratch
    # + headroom, clamped so it stays inside v7x's 64 MiB physical VMEM and above
    # v5e's 16 MiB default scoped limit.
    xp_item = jnp.dtype(x_proj.dtype).itemsize
    wh_item = jnp.dtype(wh.dtype).itemsize
    stream_bytes = tc * tb * 4 * H * xp_item + 3 * tc * tb * H * 4
    wh_bytes = H * 4 * H * wh_item
    scratch_bytes = 4 * tb * H * 4
    vmem_limit = int(2 * (stream_bytes + wh_bytes) + scratch_bytes + (2 << 20))
    vmem_limit = min(max(vmem_limit, 16 << 20), 56 << 20)

    h_seq, c_seq, n_seq = pl.pallas_call(
        kernel,
        out_shape=out_shapes,
        grid_spec=grid_spec,
        compiler_params=pltpu.CompilerParams(
            # batch tiles are independent (megacore-shardable); time is sequential
            dimension_semantics=("parallel", "arbitrary"),
            vmem_limit_bytes=vmem_limit),
    )(x_proj, wh)

    if T_pad != T:
        h_seq, c_seq, n_seq = h_seq[:T], c_seq[:T], n_seq[:T]
    return h_seq, c_seq, n_seq


# -----------------------------------------------------------------------------
# Parameter init (matches nn.init.xavier_uniform_ on a (D_in+H, 4H) weight).
# -----------------------------------------------------------------------------
def xavier_uniform(key, shape, dtype=jnp.float32):
    fan_in, fan_out = shape[0], shape[1]
    limit = math.sqrt(6.0 / (fan_in + fan_out))
    return jax.random.uniform(key, shape, dtype, minval=-limit, maxval=limit)


def init_slstm_params(key, input_size, hidden_size, num_layers):
    params = []
    for layer in range(num_layers):
        d_in = input_size if layer == 0 else hidden_size
        key, sub = jax.random.split(key)
        W = xavier_uniform(sub, (d_in + hidden_size, 4 * hidden_size))
        Bb = jnp.zeros((4 * hidden_size,), jnp.float32)
        params.append({"Wx": W[:d_in, :], "Wh": W[d_in:, :], "B": Bb})
    return params


# -----------------------------------------------------------------------------
# Full stacked sLSTM forward, mirroring the PyTorch module (incl. its list quirk).
# -----------------------------------------------------------------------------
def slstm_forward(x, params, hidden_size, batch_first=False, t_chunk=32,
                  matmul_dtype=jnp.bfloat16):
    if batch_first:
        x = jnp.transpose(x, (1, 0, 2))

    H_stack, N_stack, M_stack = [], [], []
    layer_in = x
    for p in params:
        h_seq, c_seq, n_seq = slstm_layer(layer_in, p["Wx"], p["Wh"], p["B"],
                                          t_chunk=t_chunk,
                                          matmul_dtype=matmul_dtype)
        H_stack.append(h_seq)
        N_stack.append(c_seq)   # PyTorch's `N` list actually stores c_t
        M_stack.append(n_seq)   # PyTorch's `M` list actually stores n_t
        layer_in = h_seq

    Hs = jnp.stack(H_stack, axis=0)        # (L, T, B, H)
    Cs = Hs                                # PyTorch's `C` list stores h_t again
    Ns = jnp.stack(N_stack, axis=0)
    Ms = jnp.stack(M_stack, axis=0)
    return Hs[-1], (Hs, Cs, Ns, Ms)


# -----------------------------------------------------------------------------
# Pure-JAX reference replicating the PyTorch cell math exactly, for validation.
# -----------------------------------------------------------------------------
def _reference_forward(x, params, hidden_size):
    T, B, _ = x.shape
    outs_per_layer = []
    layer_in = x
    for p in params:
        W = jnp.concatenate([p["Wx"], p["Wh"]], axis=0)
        h = c = n = m = jnp.zeros((B, hidden_size), jnp.float32)
        lh, lc, ln = [], [], []
        for t in range(T):
            combined = jnp.concatenate([layer_in[t], h], axis=1)
            gates = combined @ W + p["B"]
            z_tl, i_tl, f_tl, o_tl = jnp.split(gates, 4, axis=1)
            z_t = jnp.tanh(z_tl)
            i_t = jnp.exp(i_tl)
            f_t = jax.nn.sigmoid(f_tl)
            o_t = jax.nn.sigmoid(o_tl)
            m_t = jnp.maximum(jnp.log(f_t) + m, jnp.log(i_t))
            i_p = jnp.exp(i_tl - m_t)
            c_t = f_t * c + i_p * z_t
            n_t = f_t * n + i_p
            h_t = o_t * (c_t / n_t)
            h, c, n, m = h_t, c_t, n_t, m_t
            lh.append(h_t); lc.append(c_t); ln.append(n_t)
        h_seq = jnp.stack(lh, 0)
        outs_per_layer.append((h_seq, jnp.stack(lc, 0), jnp.stack(ln, 0)))
        layer_in = h_seq
    Hs = jnp.stack([o[0] for o in outs_per_layer], 0)
    Ns = jnp.stack([o[1] for o in outs_per_layer], 0)
    Ms = jnp.stack([o[2] for o in outs_per_layer], 0)
    return Hs[-1], (Hs, Hs, Ns, Ms)


if __name__ == "__main__":
    # Small, forward-consistent shapes: seq=8, batch=4, input_size=16, hidden=32, layers=2.
    seq_len, batch, input_size, hidden_size, num_layers = 8, 4, 16, 32, 2

    key = jax.random.PRNGKey(0)
    key, kx, kp = jax.random.split(key, 3)
    x = jax.random.normal(kx, (seq_len, batch, input_size), jnp.float32)
    params = init_slstm_params(kp, input_size, hidden_size, num_layers)

    # pure-JAX reference of the PyTorch math
    ref_out, (rH, rC, rN, rM) = _reference_forward(x, params, hidden_size)

    # (a) exact f32 path — must match the PyTorch math tightly.
    fwd_f32 = jax.jit(functools.partial(slstm_forward, hidden_size=hidden_size,
                                        batch_first=False, matmul_dtype=None))
    out32, (H32, C32, N32, M32) = fwd_f32(x, params)
    jax.block_until_ready(out32)
    assert out32.shape == (seq_len, batch, hidden_size)
    assert H32.shape == (num_layers, seq_len, batch, hidden_size)
    assert jnp.allclose(out32, ref_out, atol=1e-5, rtol=1e-5)
    assert jnp.allclose(H32, rH, atol=1e-5, rtol=1e-5)
    assert jnp.allclose(C32, rC, atol=1e-5, rtol=1e-5)
    assert jnp.allclose(N32, rN, atol=1e-5, rtol=1e-5)
    assert jnp.allclose(M32, rM, atol=1e-5, rtol=1e-5)

    # (b) performance path (default): bf16 MXU matmuls, bf16 x_proj HBM stream,
    #     approx reciprocal; recurrence carries stay f32 (looser tolerance).
    fwd_perf = jax.jit(functools.partial(slstm_forward, hidden_size=hidden_size,
                                         batch_first=False))
    out, (Hs, Cs, Ns, Ms) = fwd_perf(x, params)
    jax.block_until_ready(out)
    jax.block_until_ready(Hs)
    assert out.shape == (seq_len, batch, hidden_size)
    assert jnp.allclose(out, ref_out, atol=5e-2, rtol=5e-2)
    assert jnp.allclose(Hs, rH, atol=5e-2, rtol=5e-2)
    assert jnp.allclose(Cs, rC, atol=5e-2, rtol=5e-2)
    assert jnp.allclose(Ns, rN, atol=5e-2, rtol=5e-2)
    assert jnp.allclose(Ms, rM, atol=5e-2, rtol=5e-2)

    print("KERNEL_OK")
</pallas_src>

<mosaic_0001>
module attributes {stable_mosaic.version = 11 : i64} {
  func.func @_slstm_recurrent_kernel(%arg0: i32, %arg1: i32, %arg2: memref<8x4x128xf32, #tpu.memory_space<vmem>>, %arg3: memref<32x128xf32, #tpu.memory_space<vmem>>, %arg4: memref<8x4x32xf32, #tpu.memory_space<vmem>>, %arg5: memref<8x4x32xf32, #tpu.memory_space<vmem>>, %arg6: memref<8x4x32xf32, #tpu.memory_space<vmem>>, %arg7: memref<4x32xf32, #tpu.memory_space<vmem>>, %arg8: memref<4x32xf32, #tpu.memory_space<vmem>>, %arg9: memref<4x32xf32, #tpu.memory_space<vmem>>, %arg10: memref<4x32xf32, #tpu.memory_space<vmem>>) attributes {dimension_semantics = [#tpu.dimension_semantics<parallel>, #tpu.dimension_semantics<arbitrary>], iteration_bounds = array<i64: 1, 1>, scalar_prefetch = 0 : i64, scratch_operands = 4 : i64, tpu.core_type = #tpu.core_type<tc>, window_params = [{transform_indices = @transform_0, window_bounds = array<i64: 8, 4, 128>}, {pipeline_mode = #tpu.pipeline_mode<synchronous>, transform_indices = @transform_1, window_bounds = array<i64: 32, 128>}, {transform_indices = @transform_2, window_bounds = array<i64: 8, 4, 32>}, {transform_indices = @transform_3, window_bounds = array<i64: 8, 4, 32>}, {transform_indices = @transform_4, window_bounds = array<i64: 8, 4, 32>}]} {
    %c0_i32 = arith.constant 0 : i32
    %0 = arith.cmpi eq, %arg1, %c0_i32 : i32
    %1 = arith.extui %0 : i1 to i32
    %c0_i32_0 = arith.constant 0 : i32
    %2 = arith.cmpi ne, %1, %c0_i32_0 : i32
    scf.if %2 {
      %cst_136 = arith.constant 0.000000e+00 : f32
      %411 = vector.broadcast %cst_136 : f32 to vector<4x32xf32>
      %c0_137 = arith.constant 0 : index
      %c0_138 = arith.constant 0 : index
      %412 = vector.load %arg7[%c0_137, %c0_138] : memref<4x32xf32, #tpu.memory_space<vmem>>, vector<4x32xf32>
      tpu.vector_store %arg7[%c0_137, %c0_138], %411 {strides = array<i32>} : memref<4x32xf32, #tpu.memory_space<vmem>>, vector<4x32xf32>,
      %cst_139 = arith.constant 0.000000e+00 : f32
      %413 = vector.broadcast %cst_139 : f32 to vector<4x32xf32>
      %c0_140 = arith.constant 0 : index
      %c0_141 = arith.constant 0 : index
      %414 = vector.load %arg8[%c0_140, %c0_141] : memref<4x32xf32, #tpu.memory_space<vmem>>, vector<4x32xf32>
      tpu.vector_store %arg8[%c0_140, %c0_141], %413 {strides = array<i32>} : memref<4x32xf32, #tpu.memory_space<vmem>>, vector<4x32xf32>,
      %cst_142 = arith.constant 0.000000e+00 : f32
      %415 = vector.broadcast %cst_142 : f32 to vector<4x32xf32>
      %c0_143 = arith.constant 0 : index
      %c0_144 = arith.constant 0 : index
      %416 = vector.load %arg9[%c0_143, %c0_144] : memref<4x32xf32, #tpu.memory_space<vmem>>, vector<4x32xf32>
      tpu.vector_store %arg9[%c0_143, %c0_144], %415 {strides = array<i32>} : memref<4x32xf32, #tpu.memory_space<vmem>>, vector<4x32xf32>,
      %cst_145 = arith.constant 0.000000e+00 : f32
      %417 = vector.broadcast %cst_145 : f32 to vector<4x32xf32>
      %c0_146 = arith.constant 0 : index
      %c0_147 = arith.constant 0 : index
      %418 = vector.load %arg10[%c0_146, %c0_147] : memref<4x32xf32, #tpu.memory_space<vmem>>, vector<4x32xf32>
      tpu.vector_store %arg10[%c0_146, %c0_147], %417 {strides = array<i32>} : memref<4x32xf32, #tpu.memory_space<vmem>>, vector<4x32xf32>,
    } else {
    }
    %c0 = arith.constant 0 : index
    %c0_1 = arith.constant 0 : index
    %3 = vector.load %arg7[%c0, %c0_1] : memref<4x32xf32, #tpu.memory_space<vmem>>, vector<4x32xf32>
    %c0_2 = arith.constant 0 : index
    %c0_3 = arith.constant 0 : index
    %4 = vector.load %arg8[%c0_2, %c0_3] : memref<4x32xf32, #tpu.memory_space<vmem>>, vector<4x32xf32>
    %c0_4 = arith.constant 0 : index
    %c0_5 = arith.constant 0 : index
    %5 = vector.load %arg9[%c0_4, %c0_5] : memref<4x32xf32, #tpu.memory_space<vmem>>, vector<4x32xf32>
    %c0_6 = arith.constant 0 : index
    %c0_7 = arith.constant 0 : index
    %6 = vector.load %arg10[%c0_6, %c0_7] : memref<4x32xf32, #tpu.memory_space<vmem>>, vector<4x32xf32>
    %c0_i32_8 = arith.constant 0 : i32
    %7 = arith.index_cast %c0_i32_8 : i32 to index
    %c0_9 = arith.constant 0 : index
    %c0_10 = arith.constant 0 : index
    %8 = vector.load %arg2[%7, %c0_9, %c0_10] : memref<8x4x128xf32, #tpu.memory_space<vmem>>, vector<1x4x128xf32>
    %9 = vector.shape_cast %8 : vector<1x4x128xf32> to vector<4x128xf32>
    %c0_11 = arith.constant 0 : index
    %c0_12 = arith.constant 0 : index
    %10 = vector.load %arg3[%c0_11, %c0_12] : memref<32x128xf32, #tpu.memory_space<vmem>>, vector<32x128xf32>
    %cst = arith.constant dense<0.000000e+00> : vector<4x128xf32>
    %11 = tpu.matmul %3, %10, %cst {dimension_numbers = #tpu.dot_dimension_numbers<[1], [0], [0], [1], [0, 0, 1, 1], [], []>} : vector<4x32xf32>, vector<32x128xf32>, vector<4x128xf32> -> vector<4x128xf32>
    %12 = arith.addf %9, %11 : vector<4x128xf32>
    %13 = vector.extract_strided_slice %12 {offsets = [0, 0], sizes = [4, 32], strides = [1, 1]} : vector<4x128xf32> to vector<4x32xf32>
    %14 = vector.extract_strided_slice %12 {offsets = [0, 32], sizes = [4, 32], strides = [1, 1]} : vector<4x128xf32> to vector<4x32xf32>
    %15 = vector.extract_strided_slice %12 {offsets = [0, 64], sizes = [4, 32], strides = [1, 1]} : vector<4x128xf32> to vector<4x32xf32>
    %16 = vector.extract_strided_slice %12 {offsets = [0, 96], sizes = [4, 32], strides = [1, 1]} : vector<4x128xf32> to vector<4x32xf32>
    %17 = math.tanh %13 : vector<4x32xf32>
    %18 = arith.negf %16 : vector<4x32xf32>
    %19 = math.exp %18 : vector<4x32xf32>
    %cst_13 = arith.constant 1.000000e+00 : f32
    %20 = vector.broadcast %cst_13 : f32 to vector<4x32xf32>
    %21 = arith.addf %20, %19 : vector<4x32xf32>
    %22 = arith.divf %20, %21 : vector<4x32xf32>
    %cst_14 = arith.constant 0.000000e+00 : f32
    %23 = vector.broadcast %cst_14 : f32 to vector<4x32xf32>
    %24 = arith.minimumf %15, %23 : vector<4x32xf32>
    %25 = math.absf %15 : vector<4x32xf32>
    %cst_15 = arith.constant 0.000000e+00 : f32
    %26 = vector.broadcast %cst_15 : f32 to vector<4x32xf32>
    %27 = arith.subf %26, %25 : vector<4x32xf32>
    %28 = math.exp %27 : vector<4x32xf32>
    %cst_16 = arith.constant 1.000000e+00 : f32
    %29 = vector.broadcast %cst_16 : f32 to vector<4x32xf32>
    %30 = arith.addf %29, %28 : vector<4x32xf32>
    %31 = math.log %30 : vector<4x32xf32>
    %32 = arith.subf %24, %31 : vector<4x32xf32>
    %33 = math.exp %32 : vector<4x32xf32>
    %34 = arith.addf %32, %6 : vector<4x32xf32>
    %35 = arith.maximumf %34, %14 : vector<4x32xf32>
    %36 = arith.subf %14, %35 : vector<4x32xf32>
    %37 = math.exp %36 : vector<4x32xf32>
    %38 = arith.mulf %33, %4 : vector<4x32xf32>
    %39 = arith.mulf %37, %17 : vector<4x32xf32>
    %40 = arith.addf %38, %39 : vector<4x32xf32>
    %41 = arith.mulf %33, %5 : vector<4x32xf32>
    %42 = arith.addf %41, %37 : vector<4x32xf32>
    %43 = arith.divf %40, %42 : vector<4x32xf32>
    %44 = arith.mulf %22, %43 : vector<4x32xf32>
    %45 = arith.index_cast %c0_i32_8 : i32 to index
    %c0_17 = arith.constant 0 : index
    %c0_18 = arith.constant 0 : index
    %46 = vector.load %arg4[%45, %c0_17, %c0_18] : memref<8x4x32xf32, #tpu.memory_space<vmem>>, vector<1x4x32xf32>
    %47 = vector.shape_cast %46 : vector<1x4x32xf32> to vector<4x32xf32>
    %48 = vector.shape_cast %44 : vector<4x32xf32> to vector<1x4x32xf32>
    tpu.vector_store %arg4[%45, %c0_17, %c0_18], %48 {strides = array<i32>} : memref<8x4x32xf32, #tpu.memory_space<vmem>>, vector<1x4x32xf32>,
    %49 = arith.index_cast %c0_i32_8 : i32 to index
    %c0_19 = arith.constant 0 : index
    %c0_20 = arith.constant 0 : index
    %50 = vector.load %arg5[%49, %c0_19, %c0_20] : memref<8x4x32xf32, #tpu.memory_space<vmem>>, vector<1x4x32xf32>
    %51 = vector.shape_cast %50 : vector<1x4x32xf32> to vector<4x32xf32>
    %52 = vector.shape_cast %40 : vector<4x32xf32> to vector<1x4x32xf32>
    tpu.vector_store %arg5[%49, %c0_19, %c0_20], %52 {strides = array<i32>} : memref<8x4x32xf32, #tpu.memory_space<vmem>>, vector<1x4x32xf32>,
    %53 = arith.index_cast %c0_i32_8 : i32 to index
    %c0_21 = arith.constant 0 : index
    %c0_22 = arith.constant 0 : index
    %54 = vector.load %arg6[%53, %c0_21, %c0_22] : memref<8x4x32xf32, #tpu.memory_space<vmem>>, vector<1x4x32xf32>
    %55 = vector.shape_cast %54 : vector<1x4x32xf32> to vector<4x32xf32>
    %56 = vector.shape_cast %42 : vector<4x32xf32> to vector<1x4x32xf32>
    tpu.vector_store %arg6[%53, %c0_21, %c0_22], %56 {strides = array<i32>} : memref<8x4x32xf32, #tpu.memory_space<vmem>>, vector<1x4x32xf32>,
    %c1_i32 = arith.constant 1 : i32
    %57 = arith.index_cast %c1_i32 : i32 to index
    %c0_23 = arith.constant 0 : index
    %c0_24 = arith.constant 0 : index
    %58 = vector.load %arg2[%57, %c0_23, %c0_24] : memref<8x4x128xf32, #tpu.memory_space<vmem>>, vector<1x4x128xf32>
    %59 = vector.shape_cast %58 : vector<1x4x128xf32> to vector<4x128xf32>
    %c0_25 = arith.constant 0 : index
    %c0_26 = arith.constant 0 : index
    %60 = vector.load %arg3[%c0_25, %c0_26] : memref<32x128xf32, #tpu.memory_space<vmem>>, vector<32x128xf32>
    %cst_27 = arith.constant dense<0.000000e+00> : vector<4x128xf32>
    %61 = tpu.matmul %44, %60, %cst_27 {dimension_numbers = #tpu.dot_dimension_numbers<[1], [0], [0], [1], [0, 0, 1, 1], [], []>} : vector<4x32xf32>, vector<32x128xf32>, vector<4x128xf32> -> vector<4x128xf32>
    %62 = arith.addf %59, %61 : vector<4x128xf32>
    %63 = vector.extract_strided_slice %62 {offsets = [0, 0], sizes = [4, 32], strides = [1, 1]} : vector<4x128xf32> to vector<4x32xf32>
    %64 = vector.extract_strided_slice %62 {offsets = [0, 32], sizes = [4, 32], strides = [1, 1]} : vector<4x128xf32> to vector<4x32xf32>
    %65 = vector.extract_strided_slice %62 {offsets = [0, 64], sizes = [4, 32], strides = [1, 1]} : vector<4x128xf32> to vector<4x32xf32>
    %66 = vector.extract_strided_slice %62 {offsets = [0, 96], sizes = [4, 32], strides = [1, 1]} : vector<4x128xf32> to vector<4x32xf32>
    %67 = math.tanh %63 : vector<4x32xf32>
    %68 = arith.negf %66 : vector<4x32xf32>
    %69 = math.exp %68 : vector<4x32xf32>
    %cst_28 = arith.constant 1.000000e+00 : f32
    %70 = vector.broadcast %cst_28 : f32 to vector<4x32xf32>
    %71 = arith.addf %70, %69 : vector<4x32xf32>
    %72 = arith.divf %70, %71 : vector<4x32xf32>
    %cst_29 = arith.constant 0.000000e+00 : f32
    %73 = vector.broadcast %cst_29 : f32 to vector<4x32xf32>
    %74 = arith.minimumf %65, %73 : vector<4x32xf32>
    %75 = math.absf %65 : vector<4x32xf32>
    %cst_30 = arith.constant 0.000000e+00 : f32
    %76 = vector.broadcast %cst_30 : f32 to vector<4x32xf32>
    %77 = arith.subf %76, %75 : vector<4x32xf32>
    %78 = math.exp %77 : vector<4x32xf32>
    %cst_31 = arith.constant 1.000000e+00 : f32
    %79 = vector.broadcast %cst_31 : f32 to vector<4x32xf32>
    %80 = arith.addf %79, %78 : vector<4x32xf32>
    %81 = math.log %80 : vector<4x32xf32>
    %82 = arith.subf %74, %81 : vector<4x32xf32>
    %83 = math.exp %82 : vector<4x32xf32>
    %84 = arith.addf %82, %35 : vector<4x32xf32>
    %85 = arith.maximumf %84, %64 : vector<4x32xf32>
    %86 = arith.subf %64, %85 : vector<4x32xf32>
    %87 = math.exp %86 : vector<4x32xf32>
    %88 = arith.mulf %83, %40 : vector<4x32xf32>
    %89 = arith.mulf %87, %67 : vector<4x32xf32>
    %90 = arith.addf %88, %89 : vector<4x32xf32>
    %91 = arith.mulf %83, %42 : vector<4x32xf32>
    %92 = arith.addf %91, %87 : vector<4x32xf32>
    %93 = arith.divf %90, %92 : vector<4x32xf32>
    %94 = arith.mulf %72, %93 : vector<4x32xf32>
    %95 = arith.index_cast %c1_i32 : i32 to index
    %c0_32 = arith.constant 0 : index
    %c0_33 = arith.constant 0 : index
    %96 = vector.load %arg4[%95, %c0_32, %c0_33] : memref<8x4x32xf32, #tpu.memory_space<vmem>>, vector<1x4x32xf32>
    %97 = vector.shape_cast %96 : vector<1x4x32xf32> to vector<4x32xf32>
    %98 = vector.shape_cast %94 : vector<4x32xf32> to vector<1x4x32xf32>
    tpu.vector_store %arg4[%95, %c0_32, %c0_33], %98 {strides = array<i32>} : memref<8x4x32xf32, #tpu.memory_space<vmem>>, vector<1x4x32xf32>,
    %99 = arith.index_cast %c1_i32 : i32 to index
    %c0_34 = arith.constant 0 : index
    %c0_35 = arith.constant 0 : index
    %100 = vector.load %arg5[%99, %c0_34, %c0_35] : memref<8x4x32xf32, #tpu.memory_space<vmem>>, vector<1x4x32xf32>
    %101 = vector.shape_cast %100 : vector<1x4x32xf32> to vector<4x32xf32>
    %102 = vector.shape_cast %90 : vector<4x32xf32> to vector<1x4x32xf32>
    tpu.vector_store %arg5[%99, %c0_34, %c0_35], %102 {strides = array<i32>} : memref<8x4x32xf32, #tpu.memory_space<vmem>>, vector<1x4x32xf32>,
    %103 = arith.index_cast %c1_i32 : i32 to index
    %c0_36 = arith.constant 0 : index
    %c0_37 = arith.constant 0 : index
    %104 = vector.load %arg6[%103, %c0_36, %c0_37] : memref<8x4x32xf32, #tpu.memory_space<vmem>>, vector<1x4x32xf32>
    %105 = vector.shape_cast %104 : vector<1x4x32xf32> to vector<4x32xf32>
    %106 = vector.shape_cast %92 : vector<4x32xf32> to vector<1x4x32xf32>
    tpu.vector_store %arg6[%103, %c0_36, %c0_37], %106 {strides = array<i32>} : memref<8x4x32xf32, #tpu.memory_space<vmem>>, vector<1x4x32xf32>,
    %c2_i32 = arith.constant 2 : i32
    %107 = arith.index_cast %c2_i32 : i32 to index
    %c0_38 = arith.constant 0 : index
    %c0_39 = arith.constant 0 : index
    %108 = vector.load %arg2[%107, %c0_38, %c0_39] : memref<8x4x128xf32, #tpu.memory_space<vmem>>, vector<1x4x128xf32>
    %109 = vector.shape_cast %108 : vector<1x4x128xf32> to vector<4x128xf32>
    %c0_40 = arith.constant 0 : index
    %c0_41 = arith.constant 0 : index
    %110 = vector.load %arg3[%c0_40, %c0_41] : memref<32x128xf32, #tpu.memory_space<vmem>>, vector<32x128xf32>
    %cst_42 = arith.constant dense<0.000000e+00> : vector<4x128xf32>
    %111 = tpu.matmul %94, %110, %cst_42 {dimension_numbers = #tpu.dot_dimension_numbers<[1], [0], [0], [1], [0, 0, 1, 1], [], []>} : vector<4x32xf32>, vector<32x128xf32>, vector<4x128xf32> -> vector<4x128xf32>
    %112 = arith.addf %109, %111 : vector<4x128xf32>
    %113 = vector.extract_strided_slice %112 {offsets = [0, 0], sizes = [4, 32], strides = [1, 1]} : vector<4x128xf32> to vector<4x32xf32>
    %114 = vector.extract_strided_slice %112 {offsets = [0, 32], sizes = [4, 32], strides = [1, 1]} : vector<4x128xf32> to vector<4x32xf32>
    %115 = vector.extract_strided_slice %112 {offsets = [0, 64], sizes = [4, 32], strides = [1, 1]} : vector<4x128xf32> to vector<4x32xf32>
    %116 = vector.extract_strided_slice %112 {offsets = [0, 96], sizes = [4, 32], strides = [1, 1]} : vector<4x128xf32> to vector<4x32xf32>
    %117 = math.tanh %113 : vector<4x32xf32>
    %118 = arith.negf %116 : vector<4x32xf32>
    %119 = math.exp %118 : vector<4x32xf32>
    %cst_43 = arith.constant 1.000000e+00 : f32
    %120 = vector.broadcast %cst_43 : f32 to vector<4x32xf32>
    %121 = arith.addf %120, %119 : vector<4x32xf32>
    %122 = arith.divf %120, %121 : vector<4x32xf32>
    %cst_44 = arith.constant 0.000000e+00 : f32
    %123 = vector.broadcast %cst_44 : f32 to vector<4x32xf32>
    %124 = arith.minimumf %115, %123 : vector<4x32xf32>
    %125 = math.absf %115 : vector<4x32xf32>
    %cst_45 = arith.constant 0.000000e+00 : f32
    %126 = vector.broadcast %cst_45 : f32 to vector<4x32xf32>
    %127 = arith.subf %126, %125 : vector<4x32xf32>
    %128 = math.exp %127 : vector<4x32xf32>
    %cst_46 = arith.constant 1.000000e+00 : f32
    %129 = vector.broadcast %cst_46 : f32 to vector<4x32xf32>
    %130 = arith.addf %129, %128 : vector<4x32xf32>
    %131 = math.log %130 : vector<4x32xf32>
    %132 = arith.subf %124, %131 : vector<4x32xf32>
    %133 = math.exp %132 : vector<4x32xf32>
    %134 = arith.addf %132, %85 : vector<4x32xf32>
    %135 = arith.maximumf %134, %114 : vector<4x32xf32>
    %136 = arith.subf %114, %135 : vector<4x32xf32>
    %137 = math.exp %136 : vector<4x32xf32>
    %138 = arith.mulf %133, %90 : vector<4x32xf32>
    %139 = arith.mulf %137, %117 : vector<4x32xf32>
    %140 = arith.addf %138, %139 : vector<4x32xf32>
    %141 = arith.mulf %133, %92 : vector<4x32xf32>
    %142 = arith.addf %141, %137 : vector<4x32xf32>
    %143 = arith.divf %140, %142 : vector<4x32xf32>
    %144 = arith.mulf %122, %143 : vector<4x32xf32>
    %145 = arith.index_cast %c2_i32 : i32 to index
    %c0_47 = arith.constant 0 : index
    %c0_48 = arith.constant 0 : index
    %146 = vector.load %arg4[%145, %c0_47, %c0_48] : memref<8x4x32xf32, #tpu.memory_space<vmem>>, vector<1x4x32xf32>
    %147 = vector.shape_cast %146 : vector<1x4x32xf32> to vector<4x32xf32>
    %148 = vector.shape_cast %144 : vector<4x32xf32> to vector<1x4x32xf32>
    tpu.vector_store %arg4[%145, %c0_47, %c0_48], %148 {strides = array<i32>} : memref<8x4x32xf32, #tpu.memory_space<vmem>>, vector<1x4x32xf32>,
    %149 = arith.index_cast %c2_i32 : i32 to index
    %c0_49 = arith.constant 0 : index
    %c0_50 = arith.constant 0 : index
    %150 = vector.load %arg5[%149, %c0_49, %c0_50] : memref<8x4x32xf32, #tpu.memory_space<vmem>>, vector<1x4x32xf32>
    %151 = vector.shape_cast %150 : vector<1x4x32xf32> to vector<4x32xf32>
    %152 = vector.shape_cast %140 : vector<4x32xf32> to vector<1x4x32xf32>
    tpu.vector_store %arg5[%149, %c0_49, %c0_50], %152 {strides = array<i32>} : memref<8x4x32xf32, #tpu.memory_space<vmem>>, vector<1x4x32xf32>,
    %153 = arith.index_cast %c2_i32 : i32 to index
    %c0_51 = arith.constant 0 : index
    %c0_52 = arith.constant 0 : index
    %154 = vector.load %arg6[%153, %c0_51, %c0_52] : memref<8x4x32xf32, #tpu.memory_space<vmem>>, vector<1x4x32xf32>
    %155 = vector.shape_cast %154 : vector<1x4x32xf32> to vector<4x32xf32>
    %156 = vector.shape_cast %142 : vector<4x32xf32> to vector<1x4x32xf32>
    tpu.vector_store %arg6[%153, %c0_51, %c0_52], %156 {strides = array<i32>} : memref<8x4x32xf32, #tpu.memory_space<vmem>>, vector<1x4x32xf32>,
    %c3_i32 = arith.constant 3 : i32
    %157 = arith.index_cast %c3_i32 : i32 to index
    %c0_53 = arith.constant 0 : index
    %c0_54 = arith.constant 0 : index
    %158 = vector.load %arg2[%157, %c0_53, %c0_54] : memref<8x4x128xf32, #tpu.memory_space<vmem>>, vector<1x4x128xf32>
    %159 = vector.shape_cast %158 : vector<1x4x128xf32> to vector<4x128xf32>
    %c0_55 = arith.constant 0 : index
    %c0_56 = arith.constant 0 : index
    %160 = vector.load %arg3[%c0_55, %c0_56] : memref<32x128xf32, #tpu.memory_space<vmem>>, vector<32x128xf32>
    %cst_57 = arith.constant dense<0.000000e+00> : vector<4x128xf32>
    %161 = tpu.matmul %144, %160, %cst_57 {dimension_numbers = #tpu.dot_dimension_numbers<[1], [0], [0], [1], [0, 0, 1, 1], [], []>} : vector<4x32xf32>, vector<32x128xf32>, vector<4x128xf32> -> vector<4x128xf32>
    %162 = arith.addf %159, %161 : vector<4x128xf32>
    %163 = vector.extract_strided_slice %162 {offsets = [0, 0], sizes = [4, 32], strides = [1, 1]} : vector<4x128xf32> to vector<4x32xf32>
    %164 = vector.extract_strided_slice %162 {offsets = [0, 32], sizes = [4, 32], strides = [1, 1]} : vector<4x128xf32> to vector<4x32xf32>
    %165 = vector.extract_strided_slice %162 {offsets = [0, 64], sizes = [4, 32], strides = [1, 1]} : vector<4x128xf32> to vector<4x32xf32>
    %166 = vector.extract_strided_slice %162 {offsets = [0, 96], sizes = [4, 32], strides = [1, 1]} : vector<4x128xf32> to vector<4x32xf32>
    %167 = math.tanh %163 : vector<4x32xf32>
    %168 = arith.negf %166 : vector<4x32xf32>
    %169 = math.exp %168 : vector<4x32xf32>
    %cst_58 = arith.constant 1.000000e+00 : f32
    %170 = vector.broadcast %cst_58 : f32 to vector<4x32xf32>
    %171 = arith.addf %170, %169 : vector<4x32xf32>
    %172 = arith.divf %170, %171 : vector<4x32xf32>
    %cst_59 = arith.constant 0.000000e+00 : f32
    %173 = vector.broadcast %cst_59 : f32 to vector<4x32xf32>
    %174 = arith.minimumf %165, %173 : vector<4x32xf32>
    %175 = math.absf %165 : vector<4x32xf32>
    %cst_60 = arith.constant 0.000000e+00 : f32
    %176 = vector.broadcast %cst_60 : f32 to vector<4x32xf32>
    %177 = arith.subf %176, %175 : vector<4x32xf32>
    %178 = math.exp %177 : vector<4x32xf32>
    %cst_61 = arith.constant 1.000000e+00 : f32
    %179 = vector.broadcast %cst_61 : f32 to vector<4x32xf32>
    %180 = arith.addf %179, %178 : vector<4x32xf32>
    %181 = math.log %180 : vector<4x32xf32>
    %182 = arith.subf %174, %181 : vector<4x32xf32>
    %183 = math.exp %182 : vector<4x32xf32>
    %184 = arith.addf %182, %135 : vector<4x32xf32>
    %185 = arith.maximumf %184, %164 : vector<4x32xf32>
    %186 = arith.subf %164, %185 : vector<4x32xf32>
    %187 = math.exp %186 : vector<4x32xf32>
    %188 = arith.mulf %183, %140 : vector<4x32xf32>
    %189 = arith.mulf %187, %167 : vector<4x32xf32>
    %190 = arith.addf %188, %189 : vector<4x32xf32>
    %191 = arith.mulf %183, %142 : vector<4x32xf32>
    %192 = arith.addf %191, %187 : vector<4x32xf32>
    %193 = arith.divf %190, %192 : vector<4x32xf32>
    %194 = arith.mulf %172, %193 : vector<4x32xf32>
    %195 = arith.index_cast %c3_i32 : i32 to index
    %c0_62 = arith.constant 0 : index
    %c0_63 = arith.constant 0 : index
    %196 = vector.load %arg4[%195, %c0_62, %c0_63] : memref<8x4x32xf32, #tpu.memory_space<vmem>>, vector<1x4x32xf32>
    %197 = vector.shape_cast %196 : vector<1x4x32xf32> to vector<4x32xf32>
    %198 = vector.shape_cast %194 : vector<4x32xf32> to vector<1x4x32xf32>
    tpu.vector_store %arg4[%195, %c0_62, %c0_63], %198 {strides = array<i32>} : memref<8x4x32xf32, #tpu.memory_space<vmem>>, vector<1x4x32xf32>,
    %199 = arith.index_cast %c3_i32 : i32 to index
    %c0_64 = arith.constant 0 : index
    %c0_65 = arith.constant 0 : index
    %200 = vector.load %arg5[%199, %c0_64, %c0_65] : memref<8x4x32xf32, #tpu.memory_space<vmem>>, vector<1x4x32xf32>
    %201 = vector.shape_cast %200 : vector<1x4x32xf32> to vector<4x32xf32>
    %202 = vector.shape_cast %190 : vector<4x32xf32> to vector<1x4x32xf32>
    tpu.vector_store %arg5[%199, %c0_64, %c0_65], %202 {strides = array<i32>} : memref<8x4x32xf32, #tpu.memory_space<vmem>>, vector<1x4x32xf32>,
    %203 = arith.index_cast %c3_i32 : i32 to index
    %c0_66 = arith.constant 0 : index
    %c0_67 = arith.constant 0 : index
    %204 = vector.load %arg6[%203, %c0_66, %c0_67] : memref<8x4x32xf32, #tpu.memory_space<vmem>>, vector<1x4x32xf32>
    %205 = vector.shape_cast %204 : vector<1x4x32xf32> to vector<4x32xf32>
    %206 = vector.shape_cast %192 : vector<4x32xf32> to vector<1x4x32xf32>
    tpu.vector_store %arg6[%203, %c0_66, %c0_67], %206 {strides = array<i32>} : memref<8x4x32xf32, #tpu.memory_space<vmem>>, vector<1x4x32xf32>,
    %c4_i32 = arith.constant 4 : i32
    %207 = arith.index_cast %c4_i32 : i32 to index
    %c0_68 = arith.constant 0 : index
    %c0_69 = arith.constant 0 : index
    %208 = vector.load %arg2[%207, %c0_68, %c0_69] : memref<8x4x128xf32, #tpu.memory_space<vmem>>, vector<1x4x128xf32>
    %209 = vector.shape_cast %208 : vector<1x4x128xf32> to vector<4x128xf32>
    %c0_70 = arith.constant 0 : index
    %c0_71 = arith.constant 0 : index
    %210 = vector.load %arg3[%c0_70, %c0_71] : memref<32x128xf32, #tpu.memory_space<vmem>>, vector<32x128xf32>
    %cst_72 = arith.constant dense<0.000000e+00> : vector<4x128xf32>
    %211 = tpu.matmul %194, %210, %cst_72 {dimension_numbers = #tpu.dot_dimension_numbers<[1], [0], [0], [1], [0, 0, 1, 1], [], []>} : vector<4x32xf32>, vector<32x128xf32>, vector<4x128xf32> -> vector<4x128xf32>
    %212 = arith.addf %209, %211 : vector<4x128xf32>
    %213 = vector.extract_strided_slice %212 {offsets = [0, 0], sizes = [4, 32], strides = [1, 1]} : vector<4x128xf32> to vector<4x32xf32>
    %214 = vector.extract_strided_slice %212 {offsets = [0, 32], sizes = [4, 32], strides = [1, 1]} : vector<4x128xf32> to vector<4x32xf32>
    %215 = vector.extract_strided_slice %212 {offsets = [0, 64], sizes = [4, 32], strides = [1, 1]} : vector<4x128xf32> to vector<4x32xf32>
    %216 = vector.extract_strided_slice %212 {offsets = [0, 96], sizes = [4, 32], strides = [1, 1]} : vector<4x128xf32> to vector<4x32xf32>
    %217 = math.tanh %213 : vector<4x32xf32>
    %218 = arith.negf %216 : vector<4x32xf32>
    %219 = math.exp %218 : vector<4x32xf32>
    %cst_73 = arith.constant 1.000000e+00 : f32
    %220 = vector.broadcast %cst_73 : f32 to vector<4x32xf32>
    %221 = arith.addf %220, %219 : vector<4x32xf32>
    %222 = arith.divf %220, %221 : vector<4x32xf32>
    %cst_74 = arith.constant 0.000000e+00 : f32
    %223 = vector.broadcast %cst_74 : f32 to vector<4x32xf32>
    %224 = arith.minimumf %215, %223 : vector<4x32xf32>
    %225 = math.absf %215 : vector<4x32xf32>
    %cst_75 = arith.constant 0.000000e+00 : f32
    %226 = vector.broadcast %cst_75 : f32 to vector<4x32xf32>
    %227 = arith.subf %226, %225 : vector<4x32xf32>
    %228 = math.exp %227 : vector<4x32xf32>
    %cst_76 = arith.constant 1.000000e+00 : f32
    %229 = vector.broadcast %cst_76 : f32 to vector<4x32xf32>
    %230 = arith.addf %229, %228 : vector<4x32xf32>
    %231 = math.log %230 : vector<4x32xf32>
    %232 = arith.subf %224, %231 : vector<4x32xf32>
    %233 = math.exp %232 : vector<4x32xf32>
    %234 = arith.addf %232, %185 : vector<4x32xf32>
    %235 = arith.maximumf %234, %214 : vector<4x32xf32>
    %236 = arith.subf %214, %235 : vector<4x32xf32>
    %237 = math.exp %236 : vector<4x32xf32>
    %238 = arith.mulf %233, %190 : vector<4x32xf32>
    %239 = arith.mulf %237, %217 : vector<4x32xf32>
    %240 = arith.addf %238, %239 : vector<4x32xf32>
    %241 = arith.mulf %233, %192 : vector<4x32xf32>
    %242 = arith.addf %241, %237 : vector<4x32xf32>
    %243 = arith.divf %240, %242 : vector<4x32xf32>
    %244 = arith.mulf %222, %243 : vector<4x32xf32>
    %245 = arith.index_cast %c4_i32 : i32 to index
    %c0_77 = arith.constant 0 : index
    %c0_78 = arith.constant 0 : index
    %246 = vector.load %arg4[%245, %c0_77, %c0_78] : memref<8x4x32xf32, #tpu.memory_space<vmem>>, vector<1x4x32xf32>
    %247 = vector.shape_cast %246 : vector<1x4x32xf32> to vector<4x32xf32>
    %248 = vector.shape_cast %244 : vector<4x32xf32> to vector<1x4x32xf32>
    tpu.vector_store %arg4[%245, %c0_77, %c0_78], %248 {strides = array<i32>} : memref<8x4x32xf32, #tpu.memory_space<vmem>>, vector<1x4x32xf32>,
    %249 = arith.index_cast %c4_i32 : i32 to index
    %c0_79 = arith.constant 0 : index
    %c0_80 = arith.constant 0 : index
    %250 = vector.load %arg5[%249, %c0_79, %c0_80] : memref<8x4x32xf32, #tpu.memory_space<vmem>>, vector<1x4x32xf32>
    %251 = vector.shape_cast %250 : vector<1x4x32xf32> to vector<4x32xf32>
    %252 = vector.shape_cast %240 : vector<4x32xf32> to vector<1x4x32xf32>
    tpu.vector_store %arg5[%249, %c0_79, %c0_80], %252 {strides = array<i32>} : memref<8x4x32xf32, #tpu.memory_space<vmem>>, vector<1x4x32xf32>,
    %253 = arith.index_cast %c4_i32 : i32 to index
    %c0_81 = arith.constant 0 : index
    %c0_82 = arith.constant 0 : index
    %254 = vector.load %arg6[%253, %c0_81, %c0_82] : memref<8x4x32xf32, #tpu.memory_space<vmem>>, vector<1x4x32xf32>
    %255 = vector.shape_cast %254 : vector<1x4x32xf32> to vector<4x32xf32>
    %256 = vector.shape_cast %242 : vector<4x32xf32> to vector<1x4x32xf32>
    tpu.vector_store %arg6[%253, %c0_81, %c0_82], %256 {strides = array<i32>} : memref<8x4x32xf32, #tpu.memory_space<vmem>>, vector<1x4x32xf32>,
    %c5_i32 = arith.constant 5 : i32
    %257 = arith.index_cast %c5_i32 : i32 to index
    %c0_83 = arith.constant 0 : index
    %c0_84 = arith.constant 0 : index
    %258 = vector.load %arg2[%257, %c0_83, %c0_84] : memref<8x4x128xf32, #tpu.memory_space<vmem>>, vector<1x4x128xf32>
    %259 = vector.shape_cast %258 : vector<1x4x128xf32> to vector<4x128xf32>
    %c0_85 = arith.constant 0 : index
    %c0_86 = arith.constant 0 : index
    %260 = vector.load %arg3[%c0_85, %c0_86] : memref<32x128xf32, #tpu.memory_space<vmem>>, vector<32x128xf32>
    %cst_87 = arith.constant dense<0.000000e+00> : vector<4x128xf32>
    %261 = tpu.matmul %244, %260, %cst_87 {dimension_numbers = #tpu.dot_dimension_numbers<[1], [0], [0], [1], [0, 0, 1, 1], [], []>} : vector<4x32xf32>, vector<32x128xf32>, vector<4x128xf32> -> vector<4x128xf32>
    %262 = arith.addf %259, %261 : vector<4x128xf32>
    %263 = vector.extract_strided_slice %262 {offsets = [0, 0], sizes = [4, 32], strides = [1, 1]} : vector<4x128xf32> to vector<4x32xf32>
    %264 = vector.extract_strided_slice %262 {offsets = [0, 32], sizes = [4, 32], strides = [1, 1]} : vector<4x128xf32> to vector<4x32xf32>
    %265 = vector.extract_strided_slice %262 {offsets = [0, 64], sizes = [4, 32], strides = [1, 1]} : vector<4x128xf32> to vector<4x32xf32>
    %266 = vector.extract_strided_slice %262 {offsets = [0, 96], sizes = [4, 32], strides = [1, 1]} : vector<4x128xf32> to vector<4x32xf32>
    %267 = math.tanh %263 : vector<4x32xf32>
    %268 = arith.negf %266 : vector<4x32xf32>
    %269 = math.exp %268 : vector<4x32xf32>
    %cst_88 = arith.constant 1.000000e+00 : f32
    %270 = vector.broadcast %cst_88 : f32 to vector<4x32xf32>
    %271 = arith.addf %270, %269 : vector<4x32xf32>
    %272 = arith.divf %270, %271 : vector<4x32xf32>
    %cst_89 = arith.constant 0.000000e+00 : f32
    %273 = vector.broadcast %cst_89 : f32 to vector<4x32xf32>
    %274 = arith.minimumf %265, %273 : vector<4x32xf32>
    %275 = math.absf %265 : vector<4x32xf32>
    %cst_90 = arith.constant 0.000000e+00 : f32
    %276 = vector.broadcast %cst_90 : f32 to vector<4x32xf32>
    %277 = arith.subf %276, %275 : vector<4x32xf32>
    %278 = math.exp %277 : vector<4x32xf32>
    %cst_91 = arith.constant 1.000000e+00 : f32
    %279 = vector.broadcast %cst_91 : f32 to vector<4x32xf32>
    %280 = arith.addf %279, %278 : vector<4x32xf32>
    %281 = math.log %280 : vector<4x32xf32>
    %282 = arith.subf %274, %281 : vector<4x32xf32>
    %283 = math.exp %282 : vector<4x32xf32>
    %284 = arith.addf %282, %235 : vector<4x32xf32>
    %285 = arith.maximumf %284, %264 : vector<4x32xf32>
    %286 = arith.subf %264, %285 : vector<4x32xf32>
    %287 = math.exp %286 : vector<4x32xf32>
    %288 = arith.mulf %283, %240 : vector<4x32xf32>
    %289 = arith.mulf %287, %267 : vector<4x32xf32>
    %290 = arith.addf %288, %289 : vector<4x32xf32>
    %291 = arith.mulf %283, %242 : vector<4x32xf32>
    %292 = arith.addf %291, %287 : vector<4x32xf32>
    %293 = arith.divf %290, %292 : vector<4x32xf32>
    %294 = arith.mulf %272, %293 : vector<4x32xf32>
    %295 = arith.index_cast %c5_i32 : i32 to index
    %c0_92 = arith.constant 0 : index
    %c0_93 = arith.constant 0 : index
    %296 = vector.load %arg4[%295, %c0_92, %c0_93] : memref<8x4x32xf32, #tpu.memory_space<vmem>>, vector<1x4x32xf32>
    %297 = vector.shape_cast %296 : vector<1x4x32xf32> to vector<4x32xf32>
    %298 = vector.shape_cast %294 : vector<4x32xf32> to vector<1x4x32xf32>
    tpu.vector_store %arg4[%295, %c0_92, %c0_93], %298 {strides = array<i32>} : memref<8x4x32xf32, #tpu.memory_space<vmem>>, vector<1x4x32xf32>,
    %299 = arith.index_cast %c5_i32 : i32 to index
    %c0_94 = arith.constant 0 : index
    %c0_95 = arith.constant 0 : index
    %300 = vector.load %arg5[%299, %c0_94, %c0_95] : memref<8x4x32xf32, #tpu.memory_space<vmem>>, vector<1x4x32xf32>
    %301 = vector.shape_cast %300 : vector<1x4x32xf32> to vector<4x32xf32>
    %302 = vector.shape_cast %290 : vector<4x32xf32> to vector<1x4x32xf32>
    tpu.vector_store %arg5[%299, %c0_94, %c0_95], %302 {strides = array<i32>} : memref<8x4x32xf32, #tpu.memory_space<vmem>>, vector<1x4x32xf32>,
    %303 = arith.index_cast %c5_i32 : i32 to index
    %c0_96 = arith.constant 0 : index
    %c0_97 = arith.constant 0 : index
    %304 = vector.load %arg6[%303, %c0_96, %c0_97] : memref<8x4x32xf32, #tpu.memory_space<vmem>>, vector<1x4x32xf32>
    %305 = vector.shape_cast %304 : vector<1x4x32xf32> to vector<4x32xf32>
    %306 = vector.shape_cast %292 : vector<4x32xf32> to vector<1x4x32xf32>
    tpu.vector_store %arg6[%303, %c0_96, %c0_97], %306 {strides = array<i32>} : memref<8x4x32xf32, #tpu.memory_space<vmem>>, vector<1x4x32xf32>,
    %c6_i32 = arith.constant 6 : i32
    %307 = arith.index_cast %c6_i32 : i32 to index
    %c0_98 = arith.constant 0 : index
    %c0_99 = arith.constant 0 : index
    %308 = vector.load %arg2[%307, %c0_98, %c0_99] : memref<8x4x128xf32, #tpu.memory_space<vmem>>, vector<1x4x128xf32>
    %309 = vector.shape_cast %308 : vector<1x4x128xf32> to vector<4x128xf32>
    %c0_100 = arith.constant 0 : index
    %c0_101 = arith.constant 0 : index
    %310 = vector.load %arg3[%c0_100, %c0_101] : memref<32x128xf32, #tpu.memory_space<vmem>>, vector<32x128xf32>
    %cst_102 = arith.constant dense<0.000000e+00> : vector<4x128xf32>
    %311 = tpu.matmul %294, %310, %cst_102 {dimension_numbers = #tpu.dot_dimension_numbers<[1], [0], [0], [1], [0, 0, 1, 1], [], []>} : vector<4x32xf32>, vector<32x128xf32>, vector<4x128xf32> -> vector<4x128xf32>
    %312 = arith.addf %309, %311 : vector<4x128xf32>
    %313 = vector.extract_strided_slice %312 {offsets = [0, 0], sizes = [4, 32], strides = [1, 1]} : vector<4x128xf32> to vector<4x32xf32>
    %314 = vector.extract_strided_slice %312 {offsets = [0, 32], sizes = [4, 32], strides = [1, 1]} : vector<4x128xf32> to vector<4x32xf32>
    %315 = vector.extract_strided_slice %312 {offsets = [0, 64], sizes = [4, 32], strides = [1, 1]} : vector<4x128xf32> to vector<4x32xf32>
    %316 = vector.extract_strided_slice %312 {offsets = [0, 96], sizes = [4, 32], strides = [1, 1]} : vector<4x128xf32> to vector<4x32xf32>
    %317 = math.tanh %313 : vector<4x32xf32>
    %318 = arith.negf %316 : vector<4x32xf32>
    %319 = math.exp %318 : vector<4x32xf32>
    %cst_103 = arith.constant 1.000000e+00 : f32
    %320 = vector.broadcast %cst_103 : f32 to vector<4x32xf32>
    %321 = arith.addf %320, %319 : vector<4x32xf32>
    %322 = arith.divf %320, %321 : vector<4x32xf32>
    %cst_104 = arith.constant 0.000000e+00 : f32
    %323 = vector.broadcast %cst_104 : f32 to vector<4x32xf32>
    %324 = arith.minimumf %315, %323 : vector<4x32xf32>
    %325 = math.absf %315 : vector<4x32xf32>
    %cst_105 = arith.constant 0.000000e+00 : f32
    %326 = vector.broadcast %cst_105 : f32 to vector<4x32xf32>
    %327 = arith.subf %326, %325 : vector<4x32xf32>
    %328 = math.exp %327 : vector<4x32xf32>
    %cst_106 = arith.constant 1.000000e+00 : f32
    %329 = vector.broadcast %cst_106 : f32 to vector<4x32xf32>
    %330 = arith.addf %329, %328 : vector<4x32xf32>
    %331 = math.log %330 : vector<4x32xf32>
    %332 = arith.subf %324, %331 : vector<4x32xf32>
    %333 = math.exp %332 : vector<4x32xf32>
    %334 = arith.addf %332, %285 : vector<4x32xf32>
    %335 = arith.maximumf %334, %314 : vector<4x32xf32>
    %336 = arith.subf %314, %335 : vector<4x32xf32>
    %337 = math.exp %336 : vector<4x32xf32>
    %338 = arith.mulf %333, %290 : vector<4x32xf32>
    %339 = arith.mulf %337, %317 : vector<4x32xf32>
    %340 = arith.addf %338, %339 : vector<4x32xf32>
    %341 = arith.mulf %333, %292 : vector<4x32xf32>
    %342 = arith.addf %341, %337 : vector<4x32xf32>
    %343 = arith.divf %340, %342 : vector<4x32xf32>
    %344 = arith.mulf %322, %343 : vector<4x32xf32>
    %345 = arith.index_cast %c6_i32 : i32 to index
    %c0_107 = arith.constant 0 : index
    %c0_108 = arith.constant 0 : index
    %346 = vector.load %arg4[%345, %c0_107, %c0_108] : memref<8x4x32xf32, #tpu.memory_space<vmem>>, vector<1x4x32xf32>
    %347 = vector.shape_cast %346 : vector<1x4x32xf32> to vector<4x32xf32>
    %348 = vector.shape_cast %344 : vector<4x32xf32> to vector<1x4x32xf32>
    tpu.vector_store %arg4[%345, %c0_107, %c0_108], %348 {strides = array<i32>} : memref<8x4x32xf32, #tpu.memory_space<vmem>>, vector<1x4x32xf32>,
    %349 = arith.index_cast %c6_i32 : i32 to index
    %c0_109 = arith.constant 0 : index
    %c0_110 = arith.constant 0 : index
    %350 = vector.load %arg5[%349, %c0_109, %c0_110] : memref<8x4x32xf32, #tpu.memory_space<vmem>>, vector<1x4x32xf32>
    %351 = vector.shape_cast %350 : vector<1x4x32xf32> to vector<4x32xf32>
    %352 = vector.shape_cast %340 : vector<4x32xf32> to vector<1x4x32xf32>
    tpu.vector_store %arg5[%349, %c0_109, %c0_110], %352 {strides = array<i32>} : memref<8x4x32xf32, #tpu.memory_space<vmem>>, vector<1x4x32xf32>,
    %353 = arith.index_cast %c6_i32 : i32 to index
    %c0_111 = arith.constant 0 : index
    %c0_112 = arith.constant 0 : index
    %354 = vector.load %arg6[%353, %c0_111, %c0_112] : memref<8x4x32xf32, #tpu.memory_space<vmem>>, vector<1x4x32xf32>
    %355 = vector.shape_cast %354 : vector<1x4x32xf32> to vector<4x32xf32>
    %356 = vector.shape_cast %342 : vector<4x32xf32> to vector<1x4x32xf32>
    tpu.vector_store %arg6[%353, %c0_111, %c0_112], %356 {strides = array<i32>} : memref<8x4x32xf32, #tpu.memory_space<vmem>>, vector<1x4x32xf32>,
    %c7_i32 = arith.constant 7 : i32
    %357 = arith.index_cast %c7_i32 : i32 to index
    %c0_113 = arith.constant 0 : index
    %c0_114 = arith.constant 0 : index
    %358 = vector.load %arg2[%357, %c0_113, %c0_114] : memref<8x4x128xf32, #tpu.memory_space<vmem>>, vector<1x4x128xf32>
    %359 = vector.shape_cast %358 : vector<1x4x128xf32> to vector<4x128xf32>
    %c0_115 = arith.constant 0 : index
    %c0_116 = arith.constant 0 : index
    %360 = vector.load %arg3[%c0_115, %c0_116] : memref<32x128xf32, #tpu.memory_space<vmem>>, vector<32x128xf32>
    %cst_117 = arith.constant dense<0.000000e+00> : vector<4x128xf32>
    %361 = tpu.matmul %344, %360, %cst_117 {dimension_numbers = #tpu.dot_dimension_numbers<[1], [0], [0], [1], [0, 0, 1, 1], [], []>} : vector<4x32xf32>, vector<32x128xf32>, vector<4x128xf32> -> vector<4x128xf32>
    %362 = arith.addf %359, %361 : vector<4x128xf32>
    %363 = vector.extract_strided_slice %362 {offsets = [0, 0], sizes = [4, 32], strides = [1, 1]} : vector<4x128xf32> to vector<4x32xf32>
    %364 = vector.extract_strided_slice %362 {offsets = [0, 32], sizes = [4, 32], strides = [1, 1]} : vector<4x128xf32> to vector<4x32xf32>
    %365 = vector.extract_strided_slice %362 {offsets = [0, 64], sizes = [4, 32], strides = [1, 1]} : vector<4x128xf32> to vector<4x32xf32>
    %366 = vector.extract_strided_slice %362 {offsets = [0, 96], sizes = [4, 32], strides = [1, 1]} : vector<4x128xf32> to vector<4x32xf32>
    %367 = math.tanh %363 : vector<4x32xf32>
    %368 = arith.negf %366 : vector<4x32xf32>
    %369 = math.exp %368 : vector<4x32xf32>
    %cst_118 = arith.constant 1.000000e+00 : f32
    %370 = vector.broadcast %cst_118 : f32 to vector<4x32xf32>
    %371 = arith.addf %370, %369 : vector<4x32xf32>
    %372 = arith.divf %370, %371 : vector<4x32xf32>
    %cst_119 = arith.constant 0.000000e+00 : f32
    %373 = vector.broadcast %cst_119 : f32 to vector<4x32xf32>
    %374 = arith.minimumf %365, %373 : vector<4x32xf32>
    %375 = math.absf %365 : vector<4x32xf32>
    %cst_120 = arith.constant 0.000000e+00 : f32
    %376 = vector.broadcast %cst_120 : f32 to vector<4x32xf32>
    %377 = arith.subf %376, %375 : vector<4x32xf32>
    %378 = math.exp %377 : vector<4x32xf32>
    %cst_121 = arith.constant 1.000000e+00 : f32
    %379 = vector.broadcast %cst_121 : f32 to vector<4x32xf32>
    %380 = arith.addf %379, %378 : vector<4x32xf32>
    %381 = math.log %380 : vector<4x32xf32>
    %382 = arith.subf %374, %381 : vector<4x32xf32>
    %383 = math.exp %382 : vector<4x32xf32>
    %384 = arith.addf %382, %335 : vector<4x32xf32>
    %385 = arith.maximumf %384, %364 : vector<4x32xf32>
    %386 = arith.subf %364, %385 : vector<4x32xf32>
    %387 = math.exp %386 : vector<4x32xf32>
    %388 = arith.mulf %383, %340 : vector<4x32xf32>
    %389 = arith.mulf %387, %367 : vector<4x32xf32>
    %390 = arith.addf %388, %389 : vector<4x32xf32>
    %391 = arith.mulf %383, %342 : vector<4x32xf32>
    %392 = arith.addf %391, %387 : vector<4x32xf32>
    %393 = arith.divf %390, %392 : vector<4x32xf32>
    %394 = arith.mulf %372, %393 : vector<4x32xf32>
    %395 = arith.index_cast %c7_i32 : i32 to index
    %c0_122 = arith.constant 0 : index
    %c0_123 = arith.constant 0 : index
    %396 = vector.load %arg4[%395, %c0_122, %c0_123] : memref<8x4x32xf32, #tpu.memory_space<vmem>>, vector<1x4x32xf32>
    %397 = vector.shape_cast %396 : vector<1x4x32xf32> to vector<4x32xf32>
    %398 = vector.shape_cast %394 : vector<4x32xf32> to vector<1x4x32xf32>
    tpu.vector_store %arg4[%395, %c0_122, %c0_123], %398 {strides = array<i32>} : memref<8x4x32xf32, #tpu.memory_space<vmem>>, vector<1x4x32xf32>,
    %399 = arith.index_cast %c7_i32 : i32 to index
    %c0_124 = arith.constant 0 : index
    %c0_125 = arith.constant 0 : index
    %400 = vector.load %arg5[%399, %c0_124, %c0_125] : memref<8x4x32xf32, #tpu.memory_space<vmem>>, vector<1x4x32xf32>
    %401 = vector.shape_cast %400 : vector<1x4x32xf32> to vector<4x32xf32>
    %402 = vector.shape_cast %390 : vector<4x32xf32> to vector<1x4x32xf32>
    tpu.vector_store %arg5[%399, %c0_124, %c0_125], %402 {strides = array<i32>} : memref<8x4x32xf32, #tpu.memory_space<vmem>>, vector<1x4x32xf32>,
    %403 = arith.index_cast %c7_i32 : i32 to index
    %c0_126 = arith.constant 0 : index
    %c0_127 = arith.constant 0 : index
    %404 = vector.load %arg6[%403, %c0_126, %c0_127] : memref<8x4x32xf32, #tpu.memory_space<vmem>>, vector<1x4x32xf32>
    %405 = vector.shape_cast %404 : vector<1x4x32xf32> to vector<4x32xf32>
    %406 = vector.shape_cast %392 : vector<4x32xf32> to vector<1x4x32xf32>
    tpu.vector_store %arg6[%403, %c0_126, %c0_127], %406 {strides = array<i32>} : memref<8x4x32xf32, #tpu.memory_space<vmem>>, vector<1x4x32xf32>,
    %c8_i32 = arith.constant 8 : i32
    %c0_128 = arith.constant 0 : index
    %c0_129 = arith.constant 0 : index
    %407 = vector.load %arg7[%c0_128, %c0_129] : memref<4x32xf32, #tpu.memory_space<vmem>>, vector<4x32xf32>
    tpu.vector_store %arg7[%c0_128, %c0_129], %394 {strides = array<i32>} : memref<4x32xf32, #tpu.memory_space<vmem>>, vector<4x32xf32>,
    %c0_130 = arith.constant 0 : index
    %c0_131 = arith.constant 0 : index
    %408 = vector.load %arg8[%c0_130, %c0_131] : memref<4x32xf32, #tpu.memory_space<vmem>>, vector<4x32xf32>
    tpu.vector_store %arg8[%c0_130, %c0_131], %390 {strides = array<i32>} : memref<4x32xf32, #tpu.memory_space<vmem>>, vector<4x32xf32>,
    %c0_132 = arith.constant 0 : index
    %c0_133 = arith.constant 0 : index
    %409 = vector.load %arg9[%c0_132, %c0_133] : memref<4x32xf32, #tpu.memory_space<vmem>>, vector<4x32xf32>
    tpu.vector_store %arg9[%c0_132, %c0_133], %392 {strides = array<i32>} : memref<4x32xf32, #tpu.memory_space<vmem>>, vector<4x32xf32>,
    %c0_134 = arith.constant 0 : index
    %c0_135 = arith.constant 0 : index
    %410 = vector.load %arg10[%c0_134, %c0_135] : memref<4x32xf32, #tpu.memory_space<vmem>>, vector<4x32xf32>
    tpu.vector_store %arg10[%c0_134, %c0_135], %385 {strides = array<i32>} : memref<4x32xf32, #tpu.memory_space<vmem>>, vector<4x32xf32>,
    return
  }
  func.func @transform_0(%arg0: i32, %arg1: i32) -> (i32, i32, i32) {
    %c0_i32 = arith.constant 0 : i32
    %c0_i32_0 = arith.constant 0 : i32
    return %arg1, %arg0, %c0_i32 : i32, i32, i32
  }
  func.func @transform_1(%arg0: i32, %arg1: i32) -> (i32, i32) {
    %c0_i32 = arith.constant 0 : i32
    %c0_i32_0 = arith.constant 0 : i32
    %c0_i32_1 = arith.constant 0 : i32
    return %c0_i32, %c0_i32_0 : i32, i32
  }
  func.func @transform_2(%arg0: i32, %arg1: i32) -> (i32, i32, i32) {
    %c0_i32 = arith.constant 0 : i32
    %c0_i32_0 = arith.constant 0 : i32
    return %arg1, %arg0, %c0_i32 : i32, i32, i32
  }
  func.func @transform_3(%arg0: i32, %arg1: i32) -> (i32, i32, i32) {
    %c0_i32 = arith.constant 0 : i32
    %c0_i32_0 = arith.constant 0 : i32
    return %arg1, %arg0, %c0_i32 : i32, i32, i32
  }
  func.func @transform_4(%arg0: i32, %arg1: i32) -> (i32, i32, i32) {
    %c0_i32 = arith.constant 0 : i32
    %c0_i32_0 = arith.constant 0 : i32
    return %arg1, %arg0, %c0_i32 : i32, i32, i32
  }
}

</mosaic_0001>

<bundles_post_ra>
// kernel: slstm_forward.2
= control target key start
LH: loop header
LB: loop body
LE: loop exit
PB: predicated region body
PF: predicated region fallthrough
CT: control target
= control target key end

     0   :  { %vm18_vm0 = vcmask 257024   ;;  %v1257_v2 = vmov 0.0   ;;  %vm32_vm1 = vcmask 261120   ;;  %s1258_s23 = smov 64   ;;  %s1259_s26 = smov 32   ;;  %s1660_s1 = inlined_call_operand.vmem [shape: f32[32,128], index: 1, kind: input, shape index: {}]   ;;  %s1661_s0 = inlined_call_operand.vmem [shape: f32[8,4,128], index: 0, kind: input, shape index: {}]   ;;  %s1662_s2 = inlined_call_operand.vmem [shape: f32[8,4,32], index: 2, kind: output, shape index: {0}]   ;;  %s1663_s4 = inlined_call_operand.vmem [shape: f32[8,4,32], index: 4, kind: output, shape index: {2}]   ;;  %s1664_s3 = inlined_call_operand.vmem [shape: f32[8,4,32], index: 3, kind: output, shape index: {1}]  }
   0x1   :  { %v31_v0 = vld [vmem:[%s1660_s1 + $0x18] sm:$0xff]  ;;  %v30_v1 = vld [vmem:[%s1660_s1 + $0x10] sm:$0xff]  ;;  %19 = vst.msk [vmem:[#allocation2] sm:$0xf] %vm18_vm0, %v1257_v2  ;;  %v29_v3 = vld [vmem:[%s1660_s1 + $0x8] sm:$0xff]  ;;  %s1260_s27 = smov 96  }
   0x2   :  { %48 = vmatpush.msra.mxu0 %v31_v0  ;;  %20 = vst.msk [vmem:[#allocation3] sm:$0xf] %vm18_vm0, %v1257_v2  ;;  %186 = vmatpush.msra.mxu1 %v31_v0  ;;  %v28_v4 = vld [vmem:[%s1660_s1] sm:$0xff] }
   0x3   :  { %21 = vst.msk [vmem:[#allocation4] sm:$0xf] %vm18_vm0, %v1257_v2  ;;  %314 = vmatpush.msra.mxu2 %v31_v0  ;;  %442 = vmatpush.msra.mxu3 %v31_v0  ;;  %v27_v8 = vld [vmem:[%s1661_s0] sm:$0xf] }
   0x4   :  { %49 = vmatpush.msra.mxu0 %v30_v1  ;;  %22 = vst.msk [vmem:[#allocation5] sm:$0xf] %vm18_vm0, %v1257_v2  ;;  %187 = vmatpush.msra.mxu1 %v30_v1 }
   0x5   :  { %315 = vmatpush.msra.mxu2 %v30_v1  ;;  %443 = vmatpush.msra.mxu3 %v30_v1 }
   0x6   :  { %50 = vmatpush.msra.mxu0 %v29_v3  ;;  %188 = vmatpush.msra.mxu1 %v29_v3 }
   0x7   :  { %316 = vmatpush.msra.mxu2 %v29_v3  ;;  %444 = vmatpush.msra.mxu3 %v29_v3 }
   0x8   :  { %51 = vmatpush.msra.mxu0 %v28_v4  ;;  %v23_v5 = vld [vmem:[#allocation2] sm:$0xf]  ;;  %189 = vmatpush.msra.mxu1 %v28_v4 }
   0x9   :  { %1081 = vmatmul.msk.f32.vlgmr.msra.gmra.mxu0 %vm32_vm1, %v23_v5  ;;  %317 = vmatpush.msra.mxu2 %v28_v4  ;;  %v24_v11 = vld [vmem:[#allocation3] sm:$0xf] }
   0xa   :  { %v25_v6 = vld [vmem:[#allocation4] sm:$0xf]  ;;  %445 = vmatpush.msra.mxu3 %v28_v4  ;;  %570 = vmatpush.msrb.mxu0 %v31_v0  ;;  %v1083_v5 = vld [vmem:[%s1661_s0 + $0x4] sm:$0xf] }
   0xb   :  { %v26_v7 = vld [vmem:[#allocation5] sm:$0xf]  ;;  %121 = vrot.lane.b32.xlu2 %v25_v6, %s1258_s23  ;;  %698 = vmatpush.msrb.mxu1 %v31_v0 }
   0xc   :  { %89 = vrot.lane.b32.xlu0 %v26_v7, %s1258_s23  ;;  %571 = vmatpush.msrb.mxu0 %v30_v1 }
   0xd   :  { %699 = vmatpush.msrb.mxu1 %v30_v1  ;;  %826 = vmatpush.msrb.mxu2 %v31_v0 }
   0xe   :  { %572 = vmatpush.msrb.mxu0 %v29_v3 }
   0xf   :  { %700 = vmatpush.msrb.mxu1 %v29_v3  ;;  %827 = vmatpush.msrb.mxu2 %v30_v1 }
  0x10   :  { %573 = vmatpush.msrb.mxu0 %v28_v4 }
  0x11   :  { %701 = vmatpush.msrb.mxu1 %v28_v4  ;;  %828 = vmatpush.msrb.mxu2 %v29_v3 }
  0x13   :  { %829 = vmatpush.msrb.mxu2 %v28_v4 }
  0x65   :  { %v122_v33 = vpop.permute.xlu2 %121 }
  0x7e   :  { %v90_v19 = vpop.permute.xlu0 %89 }
  0x86   :  { %v53_v9 = vpop.f32.mrf.mxu0 }
  0x87   :  { %v56_v10 = vadd.f32 %v53_v9, %v27_v8 }
  0x89   :  { %94 = vrot.lane.b32.xlu0 %v56_v10, %s1259_s26  ;;  %v78_v12 = vand.u32 2147483647, %v56_v10  ;;  %v77_v20 = vmin.f32 %v56_v10, 0.0  ;;  %v1082_v53 = vmul.f32 -1.442695, %v56_v10 }
  0x8b   :  { %v79_v13 = vsub.f32 0.0, %v78_v12 }
  0x8d   :  { %v80_v14 = vmul.f32 1.442695, %v79_v13 }
  0x8f   :  { %1129 = vpow2.f32 %v80_v14 }
  0x91   :  { %106 = vrot.lane.b32.xlu0 %v24_v11, %s1258_s23 }
  0x95   :  { %v1130_v15 = vpop.eup %1129 }
  0x96   :  { %v82_v16 = vadd.f32 1.0, %v1130_v15 }
  0x98   :  { %1131 = vlog2.f32 %v82_v16 }
  0x99   :  { %1133 = vtanh.f32 %v56_v10 }
  0x9e   :  { %v1132_v17 = vpop.eup %1131 }
  0x9f   :  { %v84_v18 = vmul.f32 0.6931472, %v1132_v17  ;;  %v1134_v25 = vpop.eup %1133 }
  0xa1   :  { %v85_v21 = vsub.f32 %v77_v20, %v84_v18 }
  0xa3   :  { %v92_v22 = vadd.f32 %v90_v19, %v85_v21  ;;  %v86_v32 = vmul.f32 1.442695, %v85_v21 }
  0xfb   :  { %v95_v23 = vpop.permute.xlu0 %94 }
  0xfc   :  { %v1310_v24 = vmax.f32 %v92_v22, %v95_v23 }
  0xfe   :  { %99 = vrot.lane.b32.xlu1 %v1310_v24, %s1260_s27 }
 0x103   :  { %v107_v43 = vpop.permute.xlu0 %106 }
 0x106   :  { %111 = vrot.lane.b32.xlu1 %v1134_v25, %s1259_s26 }
 0x170   :  { %v100_v26 = vpop.permute.xlu1 %99 }
 0x171   :  { %v102_v27 = vsub.f32 %v56_v10, %v100_v26 }
 0x173   :  { %v103_v28 = vmul.f32 1.442695, %v102_v27 }
 0x175   :  { %1135 = vpow2.f32 %v103_v28 }
 0x176   :  { %1137 = vpow2.f32 %v86_v32 }
 0x178   :  { %v112_v30 = vpop.permute.xlu1 %111 }
 0x17b   :  { %v1136_v29 = vpop.eup %1135 }
 0x17c   :  { %v114_v31 = vmul.f32 %v1136_v29, %v112_v30  ;;  %126 = vrot.lane.b32.xlu2 %v1136_v29, %s1259_s26  ;;  %v1138_v34 = vpop.eup %1137 }
 0x17d   :  { %v124_v35 = vmul.f32 %v1138_v34, %v122_v33  ;;  %v109_v46 = vmul.f32 %v1138_v34, %v107_v43 }
 0x17e   :  { %116 = vrot.lane.b32.xlu1 %v114_v31, %s1259_s26 }
 0x1d6   :  { %v127_v36 = vpop.permute.xlu2 %126 }
 0x1d7   :  { %v1317_v37 = vadd.f32 %v127_v36, %v124_v35 }
 0x1d9   :  { %1139 = vrcp.f32 %v1317_v37  ;;  %v141_v44 = vand.u32 2147483648, %v1317_v37  ;;  %vm135_vm3 = vweird.f32 %v1317_v37  ;;  %v139_v45 = vand.u32 2147483647, %v1317_v37 }
 0x1da   :  { %1141 = vpow2.f32 %v1082_v53 }
 0x1db   :  { %v142_v49 = vor.u32 1.1754944e-38, %v141_v44  ;;  %vm140_vm5 = vcmp.eq.f32.partialorder %v139_v45, 8.507059e+37 }
 0x1df   :  { %v1140_v38 = vpop.eup %1139 }
 0x1e0   :  { %v131_v39 = vmul.f32 %v1140_v38, %v1317_v37  ;;  %vm136_vm2 = vweird.f32 %v1140_v38  ;;  %v1142_v54 = vpop.eup %1141 }
 0x1e1   :  { %vm137_vm4 = vmor %vm135_vm3, %vm136_vm2  ;;  %v61_v55 = vadd.f32 1.0, %v1142_v54 }
 0x1e2   :  { %v132_v40 = vsub.f32 1.0, %v131_v39 }
 0x1e3   :  { %1143 = vrcp.f32 %v61_v55  ;;  %v73_v61 = vand.u32 2147483648, %v61_v55  ;;  %vm67_vm7 = vweird.f32 %v61_v55  ;;  %v71_v62 = vand.u32 2147483647, %v61_v55 }
 0x1e4   :  { %v133_v41 = vmul.f32 %v1140_v38, %v132_v40 }
 0x1e5   :  { %v74_v0 = vor.u32 1.1754944e-38, %v73_v61  ;;  %vm72_vm9 = vcmp.eq.f32.partialorder %v71_v62, 8.507059e+37 }
 0x1e6   :  { %v134_v42 = vadd.f32 %v1140_v38, %v133_v41 }
 0x1e8   :  { %v138_v47 = vsel %vm137_vm4, %v1140_v38, %v134_v42 }
 0x1e9   :  { %v143_v51 = vsel %vm140_vm5, %v142_v49, %v138_v47  ;;  %v1144_v56 = vpop.eup %1143 }
 0x1ea   :  { %v63_v57 = vmul.f32 %v1144_v56, %v61_v55  ;;  %vm68_vm6 = vweird.f32 %v1144_v56 }
 0x1eb   :  { %vm69_vm8 = vmor %vm67_vm7, %vm68_vm6 }
 0x1ec   :  { %v64_v58 = vsub.f32 1.0, %v63_v57 }
 0x1ee   :  { %v65_v59 = vmul.f32 %v1144_v56, %v64_v58 }
 0x1f0   :  { %v117_v48 = vpop.permute.xlu1 %116  ;;  %v66_v60 = vadd.f32 %v1144_v56, %v65_v59 }
 0x1f1   :  { %v1324_v50 = vadd.f32 %v117_v48, %v109_v46 }
 0x1f2   :  { %v70_v63 = vsel %vm69_vm8, %v1144_v56, %v66_v60 }
 0x1f3   :  { %v144_v52 = vmul.f32 %v143_v51, %v1324_v50  ;;  %v75_v1 = vsel %vm72_vm9, %v74_v0, %v70_v63  ;;  %v1089_v0 = vld [vmem:[%s1661_s0 + $0x8] sm:$0xf] }
 0x1f5   :  { %146 = vrot.lane.b32.xlu2 %v144_v52, %s1259_s26 }
 0x24f   :  { %v147_v2 = vpop.permute.xlu2 %146 }
 0x250   :  { %v149_v3 = vmul.f32 %v147_v2, %v75_v1 }
 0x252   :  { %151 = vrot.lane.b32.xlu0 %v149_v3, %s1259_s26 }
 0x2c4   :  { %v152_v4 = vpop.permute.xlu0 %151 }
 0x2c5   :  { %155 = vst.msk [vmem:[%s1662_s2] sm:$0xf] %vm18_vm0, %v152_v4  ;;  %1084 = vmatmul.msk.f32.vlgmr.msra.gmra.mxu1 %vm32_vm1, %v152_v4 }
 0x342   :  { %v191_v6 = vpop.f32.mrf.mxu1 }
 0x343   :  { %v194_v7 = vadd.f32 %v1083_v5, %v191_v6 }
 0x345   :  { %228 = vrot.lane.b32.xlu1 %v194_v7, %s1259_s26  ;;  %1145 = vtanh.f32 %v194_v7  ;;  %v216_v9 = vand.u32 2147483647, %v194_v7  ;;  %v215_v16 = vmin.f32 %v194_v7, 0.0  ;;  %v1085_v47 = vmul.f32 -1.442695, %v194_v7 }
 0x347   :  { %v217_v10 = vsub.f32 0.0, %v216_v9 }
 0x349   :  { %v218_v11 = vmul.f32 1.442695, %v217_v10 }
 0x34b   :  { %v1146_v8 = vpop.eup %1145  ;;  %1147 = vpow2.f32 %v218_v11 }
 0x34c   :  { %241 = vrot.lane.b32.xlu0 %v1146_v8, %s1259_s26 }
 0x351   :  { %v1148_v12 = vpop.eup %1147 }
 0x352   :  { %v220_v13 = vadd.f32 1.0, %v1148_v12 }
 0x354   :  { %1149 = vlog2.f32 %v220_v13 }
 0x35a   :  { %v1150_v14 = vpop.eup %1149 }
 0x35b   :  { %v222_v15 = vmul.f32 0.6931472, %v1150_v14 }
 0x35d   :  { %v223_v17 = vsub.f32 %v215_v16, %v222_v15 }
 0x35f   :  { %v226_v18 = vadd.f32 %v223_v17, %v1310_v24  ;;  %v224_v28 = vmul.f32 1.442695, %v223_v17 }
 0x3b7   :  { %v229_v19 = vpop.permute.xlu1 %228 }
 0x3b8   :  { %v1340_v20 = vmax.f32 %v226_v18, %v229_v19 }
 0x3ba   :  { %233 = vrot.lane.b32.xlu2 %v1340_v20, %s1260_s27 }
 0x3be   :  { %v242_v26 = vpop.permute.xlu0 %241 }
 0x414   :  { %v234_v21 = vpop.permute.xlu2 %233 }
 0x415   :  { %v236_v22 = vsub.f32 %v194_v7, %v234_v21 }
 0x417   :  { %v237_v23 = vmul.f32 1.442695, %v236_v22 }
 0x419   :  { %1151 = vpow2.f32 %v237_v23 }
 0x41a   :  { %1153 = vpow2.f32 %v224_v28 }
 0x41f   :  { %v1152_v25 = vpop.eup %1151 }
 0x420   :  { %252 = vrot.lane.b32.xlu1 %v1152_v25, %s1259_s26  ;;  %v244_v27 = vmul.f32 %v1152_v25, %v242_v26  ;;  %v1154_v24 = vpop.eup %1153 }
 0x421   :  { %v250_v29 = vmul.f32 %v1154_v24, %v1317_v37  ;;  %v239_v40 = vmul.f32 %v1154_v24, %v1324_v50 }
 0x422   :  { %246 = vrot.lane.b32.xlu2 %v244_v27, %s1259_s26 }
 0x47c   :  { %v247_v39 = vpop.permute.xlu2 %246 }
 0x47d   :  { %v1355_v43 = vadd.f32 %v247_v39, %v239_v40 }
 0x492   :  { %v253_v30 = vpop.permute.xlu1 %252 }
 0x493   :  { %v1347_v31 = vadd.f32 %v253_v30, %v250_v29 }
 0x495   :  { %1155 = vrcp.f32 %v1347_v31  ;;  %v267_v35 = vand.u32 2147483648, %v1347_v31  ;;  %v265_v38 = vand.u32 2147483647, %v1347_v31  ;;  %vm261_vm11 = vweird.f32 %v1347_v31 }
 0x496   :  { %1157 = vpow2.f32 %v1085_v47 }
 0x497   :  { %v268_v42 = vor.u32 1.1754944e-38, %v267_v35  ;;  %vm266_vm13 = vcmp.eq.f32.partialorder %v265_v38, 8.507059e+37 }
 0x49b   :  { %v1156_v32 = vpop.eup %1155 }
 0x49c   :  { %v257_v33 = vmul.f32 %v1156_v32, %v1347_v31  ;;  %vm262_vm10 = vweird.f32 %v1156_v32  ;;  %v1158_v48 = vpop.eup %1157 }
 0x49d   :  { %vm263_vm12 = vmor %vm261_vm11, %vm262_vm10  ;;  %v199_v49 = vadd.f32 1.0, %v1158_v48 }
 0x49e   :  { %v258_v34 = vsub.f32 1.0, %v257_v33 }
 0x49f   :  { %1159 = vrcp.f32 %v199_v49  ;;  %v211_v56 = vand.u32 2147483648, %v199_v49  ;;  %vm205_vm15 = vweird.f32 %v199_v49  ;;  %v209_v57 = vand.u32 2147483647, %v199_v49 }
 0x4a0   :  { %v259_v36 = vmul.f32 %v1156_v32, %v258_v34 }
 0x4a1   :  { %v212_v59 = vor.u32 1.1754944e-38, %v211_v56  ;;  %vm210_vm3 = vcmp.eq.f32.partialorder %v209_v57, 8.507059e+37 }
 0x4a2   :  { %v260_v41 = vadd.f32 %v1156_v32, %v259_v36 }
 0x4a4   :  { %v264_v44 = vsel %vm263_vm12, %v1156_v32, %v260_v41 }
 0x4a5   :  { %v269_v45 = vsel %vm266_vm13, %v268_v42, %v264_v44  ;;  %v1160_v51 = vpop.eup %1159 }
 0x4a6   :  { %v270_v46 = vmul.f32 %v269_v45, %v1355_v43  ;;  %v201_v52 = vmul.f32 %v1160_v51, %v199_v49  ;;  %vm206_vm14 = vweird.f32 %v1160_v51 }
 0x4a7   :  { %vm207_vm2 = vmor %vm205_vm15, %vm206_vm14 }
 0x4a8   :  { %272 = vrot.lane.b32.xlu0 %v270_v46, %s1259_s26  ;;  %v202_v53 = vsub.f32 1.0, %v201_v52 }
 0x4aa   :  { %v203_v54 = vmul.f32 %v1160_v51, %v202_v53 }
 0x4ac   :  { %v204_v55 = vadd.f32 %v1160_v51, %v203_v54 }
 0x4ae   :  { %v208_v58 = vsel %vm207_vm2, %v1160_v51, %v204_v55 }
 0x4af   :  { %v213_v60 = vsel %vm210_vm3, %v212_v59, %v208_v58 }
 0x51a   :  { %v273_v61 = vpop.permute.xlu0 %272 }
 0x51b   :  { %v275_v62 = vmul.f32 %v273_v61, %v213_v60  ;;  %v1095_v61 = vld [vmem:[%s1661_s0 + $0xc] sm:$0xf] }
 0x51d   :  { %277 = vrot.lane.b32.xlu1 %v275_v62, %s1259_s26 }
 0x58f   :  { %v278_v63 = vpop.permute.xlu1 %277 }
 0x590   :  { %1086 = vst.msk [vmem:[%s1662_s2 + $0x4] sm:$0xf] %vm18_vm0, %v278_v63  ;;  %1090 = vmatmul.msk.f32.vlgmr.msra.gmra.mxu2 %vm32_vm1, %v278_v63 }
 0x613   :  { %v319_v1 = vpop.f32.mrf.mxu2 }
 0x614   :  { %v322_v2 = vadd.f32 %v1089_v0, %v319_v1 }
 0x616   :  { %356 = vrot.lane.b32.xlu2 %v322_v2, %s1259_s26  ;;  %1161 = vtanh.f32 %v322_v2  ;;  %v344_v4 = vand.u32 2147483647, %v322_v2  ;;  %v343_v11 = vmin.f32 %v322_v2, 0.0  ;;  %v1091_v44 = vmul.f32 -1.442695, %v322_v2 }
 0x618   :  { %v345_v5 = vsub.f32 0.0, %v344_v4 }
 0x61a   :  { %v346_v6 = vmul.f32 1.442695, %v345_v5 }
 0x61c   :  { %v1162_v3 = vpop.eup %1161  ;;  %1163 = vpow2.f32 %v346_v6 }
 0x61d   :  { %369 = vrot.lane.b32.xlu1 %v1162_v3, %s1259_s26 }
 0x622   :  { %v1164_v7 = vpop.eup %1163 }
 0x623   :  { %v348_v8 = vadd.f32 1.0, %v1164_v7 }
 0x625   :  { %1165 = vlog2.f32 %v348_v8 }
 0x62b   :  { %v1166_v9 = vpop.eup %1165 }
 0x62c   :  { %v350_v10 = vmul.f32 0.6931472, %v1166_v9 }
 0x62e   :  { %v351_v12 = vsub.f32 %v343_v11, %v350_v10 }
 0x630   :  { %v354_v13 = vadd.f32 %v351_v12, %v1340_v20  ;;  %v352_v23 = vmul.f32 1.442695, %v351_v12 }
 0x670   :  { %v357_v14 = vpop.permute.xlu2 %356 }
 0x671   :  { %v1371_v15 = vmax.f32 %v354_v13, %v357_v14 }
 0x673   :  { %361 = vrot.lane.b32.xlu0 %v1371_v15, %s1260_s27 }
 0x68f   :  { %v370_v21 = vpop.permute.xlu1 %369 }
 0x6e5   :  { %v362_v16 = vpop.permute.xlu0 %361 }
 0x6e6   :  { %v364_v17 = vsub.f32 %v322_v2, %v362_v16 }
 0x6e8   :  { %v365_v18 = vmul.f32 1.442695, %v364_v17 }
 0x6ea   :  { %1167 = vpow2.f32 %v365_v18 }
 0x6eb   :  { %1169 = vpow2.f32 %v352_v23 }
 0x6f0   :  { %v1168_v19 = vpop.eup %1167 }
 0x6f1   :  { %380 = vrot.lane.b32.xlu2 %v1168_v19, %s1259_s26  ;;  %v372_v22 = vmul.f32 %v1168_v19, %v370_v21  ;;  %v1170_v20 = vpop.eup %1169 }
 0x6f2   :  { %v378_v25 = vmul.f32 %v1170_v20, %v1347_v31  ;;  %v367_v35 = vmul.f32 %v1170_v20, %v1355_v43 }
 0x6f3   :  { %374 = vrot.lane.b32.xlu0 %v372_v22, %s1259_s26 }
 0x74b   :  { %v381_v26 = vpop.permute.xlu2 %380 }
 0x74c   :  { %v1378_v27 = vadd.f32 %v381_v26, %v378_v25 }
 0x74e   :  { %1171 = vrcp.f32 %v1378_v27  ;;  %v395_v33 = vand.u32 2147483648, %v1378_v27  ;;  %vm389_vm5 = vweird.f32 %v1378_v27  ;;  %v393_v34 = vand.u32 2147483647, %v1378_v27 }
 0x74f   :  { %1173 = vpow2.f32 %v1091_v44 }
 0x750   :  { %v396_v39 = vor.u32 1.1754944e-38, %v395_v33  ;;  %vm394_vm7 = vcmp.eq.f32.partialorder %v393_v34, 8.507059e+37 }
 0x754   :  { %v1172_v28 = vpop.eup %1171 }
 0x755   :  { %v385_v24 = vmul.f32 %v1172_v28, %v1378_v27  ;;  %vm390_vm4 = vweird.f32 %v1172_v28  ;;  %v1174_v45 = vpop.eup %1173 }
 0x756   :  { %vm391_vm6 = vmor %vm389_vm5, %vm390_vm4  ;;  %v327_v46 = vadd.f32 1.0, %v1174_v45 }
 0x757   :  { %v386_v29 = vsub.f32 1.0, %v385_v24 }
 0x758   :  { %1175 = vrcp.f32 %v327_v46  ;;  %v339_v53 = vand.u32 2147483648, %v327_v46  ;;  %vm333_vm9 = vweird.f32 %v327_v46  ;;  %v337_v54 = vand.u32 2147483647, %v327_v46 }
 0x759   :  { %v387_v30 = vmul.f32 %v1172_v28, %v386_v29 }
 0x75a   :  { %v340_v56 = vor.u32 1.1754944e-38, %v339_v53  ;;  %vm338_vm11 = vcmp.eq.f32.partialorder %v337_v54, 8.507059e+37 }
 0x75b   :  { %v388_v32 = vadd.f32 %v1172_v28, %v387_v30 }
 0x75d   :  { %v392_v36 = vsel %vm391_vm6, %v1172_v28, %v388_v32 }
 0x75e   :  { %v397_v41 = vsel %vm394_vm7, %v396_v39, %v392_v36  ;;  %v1176_v47 = vpop.eup %1175 }
 0x75f   :  { %v329_v48 = vmul.f32 %v1176_v47, %v327_v46  ;;  %vm334_vm8 = vweird.f32 %v1176_v47 }
 0x760   :  { %vm335_vm10 = vmor %vm333_vm9, %vm334_vm8 }
 0x761   :  { %v330_v49 = vsub.f32 1.0, %v329_v48 }
 0x763   :  { %v331_v51 = vmul.f32 %v1176_v47, %v330_v49 }
 0x765   :  { %v375_v38 = vpop.permute.xlu0 %374  ;;  %v332_v52 = vadd.f32 %v1176_v47, %v331_v51 }
 0x766   :  { %v1386_v40 = vadd.f32 %v375_v38, %v367_v35 }
 0x767   :  { %v336_v55 = vsel %vm335_vm10, %v1176_v47, %v332_v52 }
 0x768   :  { %v398_v42 = vmul.f32 %v397_v41, %v1386_v40  ;;  %v341_v57 = vsel %vm338_vm11, %v340_v56, %v336_v55 }
 0x76a   :  { %400 = vrot.lane.b32.xlu1 %v398_v42, %s1259_s26 }
 0x7dc   :  { %v401_v58 = vpop.permute.xlu1 %400 }
 0x7dd   :  { %v403_v59 = vmul.f32 %v401_v58, %v341_v57 }
 0x7df   :  { %405 = vrot.lane.b32.xlu2 %v403_v59, %s1259_s26 }
 0x839   :  { %v406_v60 = vpop.permute.xlu2 %405 }
 0x83a   :  { %1092 = vst.msk [vmem:[%s1662_s2 + $0x8] sm:$0xf] %vm18_vm0, %v406_v60  ;;  %1096 = vmatmul.msk.f32.vlgmr.msra.gmra.mxu3 %vm32_vm1, %v406_v60  ;;  %v1101_v60 = vld [vmem:[%s1661_s0 + $0x10] sm:$0xf] }
 0x8bd   :  { %v447_v62 = vpop.f32.mrf.mxu3 }
 0x8be   :  { %v450_v63 = vadd.f32 %v1095_v61, %v447_v62 }
 0x8c0   :  { %484 = vrot.lane.b32.xlu0 %v450_v63, %s1259_s26  ;;  %1177 = vtanh.f32 %v450_v63  ;;  %v472_v1 = vand.u32 2147483647, %v450_v63  ;;  %v471_v8 = vmin.f32 %v450_v63, 0.0  ;;  %v1097_v42 = vmul.f32 -1.442695, %v450_v63 }
 0x8c2   :  { %v473_v2 = vsub.f32 0.0, %v472_v1 }
 0x8c4   :  { %v474_v3 = vmul.f32 1.442695, %v473_v2 }
 0x8c6   :  { %v1178_v0 = vpop.eup %1177  ;;  %1179 = vpow2.f32 %v474_v3 }
 0x8c7   :  { %497 = vrot.lane.b32.xlu2 %v1178_v0, %s1259_s26 }
 0x8cc   :  { %v1180_v4 = vpop.eup %1179 }
 0x8cd   :  { %v476_v5 = vadd.f32 1.0, %v1180_v4 }
 0x8cf   :  { %1181 = vlog2.f32 %v476_v5 }
 0x8d5   :  { %v1182_v6 = vpop.eup %1181 }
 0x8d6   :  { %v478_v7 = vmul.f32 0.6931472, %v1182_v6 }
 0x8d8   :  { %v479_v9 = vsub.f32 %v471_v8, %v478_v7 }
 0x8da   :  { %v482_v10 = vadd.f32 %v479_v9, %v1371_v15  ;;  %v480_v21 = vmul.f32 1.442695, %v479_v9 }
 0x921   :  { %v498_v18 = vpop.permute.xlu2 %497 }
 0x932   :  { %v485_v11 = vpop.permute.xlu0 %484 }
 0x933   :  { %v1402_v12 = vmax.f32 %v482_v10, %v485_v11 }
 0x935   :  { %489 = vrot.lane.b32.xlu1 %v1402_v12, %s1260_s27 }
 0x9a7   :  { %v490_v13 = vpop.permute.xlu1 %489 }
 0x9a8   :  { %v492_v14 = vsub.f32 %v450_v63, %v490_v13 }
 0x9aa   :  { %v493_v16 = vmul.f32 1.442695, %v492_v14 }
 0x9ac   :  { %1183 = vpow2.f32 %v493_v16 }
 0x9ad   :  { %1185 = vpow2.f32 %v480_v21 }
 0x9b2   :  { %v1184_v17 = vpop.eup %1183 }
 0x9b3   :  { %508 = vrot.lane.b32.xlu0 %v1184_v17, %s1259_s26  ;;  %v500_v19 = vmul.f32 %v1184_v17, %v498_v18  ;;  %v1186_v15 = vpop.eup %1185 }
 0x9b4   :  { %v506_v22 = vmul.f32 %v1186_v15, %v1378_v27  ;;  %v495_v33 = vmul.f32 %v1186_v15, %v1386_v40 }
 0x9b5   :  { %502 = vrot.lane.b32.xlu1 %v500_v19, %s1259_s26 }
 0xa25   :  { %v509_v23 = vpop.permute.xlu0 %508 }
 0xa26   :  { %v1409_v20 = vadd.f32 %v509_v23, %v506_v22 }
 0xa27   :  { %v503_v32 = vpop.permute.xlu1 %502 }
 0xa28   :  { %1187 = vrcp.f32 %v1409_v20  ;;  %v523_v24 = vand.u32 2147483648, %v1409_v20  ;;  %v521_v30 = vand.u32 2147483647, %v1409_v20  ;;  %vm517_vm13 = vweird.f32 %v1409_v20 }
 0xa29   :  { %v1417_v36 = vadd.f32 %v503_v32, %v495_v33  ;;  %1189 = vpow2.f32 %v1097_v42 }
 0xa2a   :  { %v524_v35 = vor.u32 1.1754944e-38, %v523_v24  ;;  %vm522_vm15 = vcmp.eq.f32.partialorder %v521_v30, 8.507059e+37 }
 0xa2e   :  { %v1188_v25 = vpop.eup %1187 }
 0xa2f   :  { %v513_v26 = vmul.f32 %v1188_v25, %v1409_v20  ;;  %vm518_vm12 = vweird.f32 %v1188_v25  ;;  %v1190_v44 = vpop.eup %1189 }
 0xa30   :  { %vm519_vm14 = vmor %vm517_vm13, %vm518_vm12  ;;  %v455_v45 = vadd.f32 1.0, %v1190_v44 }
 0xa31   :  { %v514_v28 = vsub.f32 1.0, %v513_v26 }
 0xa32   :  { %1191 = vrcp.f32 %v455_v45  ;;  %v467_v52 = vand.u32 2147483648, %v455_v45  ;;  %vm461_vm3 = vweird.f32 %v455_v45  ;;  %v465_v53 = vand.u32 2147483647, %v455_v45 }
 0xa33   :  { %v515_v29 = vmul.f32 %v1188_v25, %v514_v28 }
 0xa34   :  { %v468_v55 = vor.u32 1.1754944e-38, %v467_v52  ;;  %vm466_vm5 = vcmp.eq.f32.partialorder %v465_v53, 8.507059e+37 }
 0xa35   :  { %v516_v34 = vadd.f32 %v1188_v25, %v515_v29 }
 0xa37   :  { %v520_v38 = vsel %vm519_vm14, %v1188_v25, %v516_v34 }
 0xa38   :  { %v525_v39 = vsel %vm522_vm15, %v524_v35, %v520_v38  ;;  %v1192_v46 = vpop.eup %1191 }
 0xa39   :  { %v526_v41 = vmul.f32 %v525_v39, %v1417_v36  ;;  %v457_v47 = vmul.f32 %v1192_v46, %v455_v45  ;;  %vm462_vm2 = vweird.f32 %v1192_v46 }
 0xa3a   :  { %vm463_vm4 = vmor %vm461_vm3, %vm462_vm2 }
 0xa3b   :  { %528 = vrot.lane.b32.xlu2 %v526_v41, %s1259_s26  ;;  %v458_v48 = vsub.f32 1.0, %v457_v47 }
 0xa3d   :  { %v459_v49 = vmul.f32 %v1192_v46, %v458_v48 }
 0xa3f   :  { %v460_v51 = vadd.f32 %v1192_v46, %v459_v49 }
 0xa41   :  { %v464_v54 = vsel %vm463_vm4, %v1192_v46, %v460_v51 }
 0xa42   :  { %v469_v56 = vsel %vm466_vm5, %v468_v55, %v464_v54 }
 0xa95   :  { %v529_v57 = vpop.permute.xlu2 %528 }
 0xa96   :  { %v531_v58 = vmul.f32 %v529_v57, %v469_v56 }
 0xa98   :  { %533 = vrot.lane.b32.xlu0 %v531_v58, %s1259_s26 }
 0xb0a   :  { %v534_v59 = vpop.permute.xlu0 %533 }
 0xb0b   :  { %1098 = vst.msk [vmem:[%s1662_s2 + $0xc] sm:$0xf] %vm18_vm0, %v534_v59  ;;  %1102 = vmatmul.msk.f32.vlgmr.msrb.gmra.mxu0 %vm32_vm1, %v534_v59 }
 0xb88   :  { %v575_v61 = vpop.f32.mrf.mxu0 }
 0xb89   :  { %v578_v62 = vadd.f32 %v1101_v60, %v575_v61  ;;  %v1107_v61 = vld [vmem:[%s1661_s0 + $0x14] sm:$0xf] }
 0xb8b   :  { %612 = vrot.lane.b32.xlu1 %v578_v62, %s1259_s26  ;;  %1193 = vtanh.f32 %v578_v62  ;;  %v600_v0 = vand.u32 2147483647, %v578_v62  ;;  %v599_v7 = vmin.f32 %v578_v62, 0.0  ;;  %v1103_v44 = vmul.f32 -1.442695, %v578_v62 }
 0xb8d   :  { %v601_v1 = vsub.f32 0.0, %v600_v0 }
 0xb8f   :  { %v602_v2 = vmul.f32 1.442695, %v601_v1 }
 0xb91   :  { %v1194_v63 = vpop.eup %1193  ;;  %1195 = vpow2.f32 %v602_v2 }
 0xb92   :  { %625 = vrot.lane.b32.xlu0 %v1194_v63, %s1259_s26 }
 0xb97   :  { %v1196_v3 = vpop.eup %1195 }
 0xb98   :  { %v604_v4 = vadd.f32 1.0, %v1196_v3 }
 0xb9a   :  { %1197 = vlog2.f32 %v604_v4 }
 0xba0   :  { %v1198_v5 = vpop.eup %1197 }
 0xba1   :  { %v606_v6 = vmul.f32 0.6931472, %v1198_v5 }
 0xba3   :  { %v607_v8 = vsub.f32 %v599_v7, %v606_v6 }
 0xba5   :  { %v610_v9 = vadd.f32 %v607_v8, %v1402_v12  ;;  %v608_v21 = vmul.f32 1.442695, %v607_v8 }
 0xbfd   :  { %v613_v10 = vpop.permute.xlu1 %612 }
 0xbfe   :  { %v1433_v11 = vmax.f32 %v610_v9, %v613_v10 }
 0xc00   :  { %617 = vrot.lane.b32.xlu2 %v1433_v11, %s1260_s27 }
 0xc04   :  { %v626_v18 = vpop.permute.xlu0 %625 }
 0xc5a   :  { %v618_v13 = vpop.permute.xlu2 %617 }
 0xc5b   :  { %v620_v14 = vsub.f32 %v578_v62, %v618_v13 }
 0xc5d   :  { %v621_v16 = vmul.f32 1.442695, %v620_v14 }
 0xc5f   :  { %1199 = vpow2.f32 %v621_v16 }
 0xc60   :  { %1201 = vpow2.f32 %v608_v21 }
 0xc65   :  { %v1200_v17 = vpop.eup %1199 }
 0xc66   :  { %636 = vrot.lane.b32.xlu1 %v1200_v17, %s1259_s26  ;;  %v628_v19 = vmul.f32 %v1200_v17, %v626_v18  ;;  %v1202_v12 = vpop.eup %1201 }
 0xc67   :  { %v634_v15 = vmul.f32 %v1202_v12, %v1409_v20  ;;  %v623_v33 = vmul.f32 %v1202_v12, %v1417_v36 }
 0xc68   :  { %630 = vrot.lane.b32.xlu2 %v628_v19, %s1259_s26 }
 0xcc2   :  { %v631_v32 = vpop.permute.xlu2 %630 }
 0xcc3   :  { %v1448_v38 = vadd.f32 %v631_v32, %v623_v33 }
 0xcd8   :  { %v637_v22 = vpop.permute.xlu1 %636 }
 0xcd9   :  { %v1440_v23 = vadd.f32 %v637_v22, %v634_v15 }
 0xcdb   :  { %1203 = vrcp.f32 %v1440_v23  ;;  %v651_v24 = vand.u32 2147483648, %v1440_v23  ;;  %v649_v30 = vand.u32 2147483647, %v1440_v23  ;;  %vm645_vm7 = vweird.f32 %v1440_v23 }
 0xcdc   :  { %1205 = vpow2.f32 %v1103_v44 }
 0xcdd   :  { %v652_v35 = vor.u32 1.1754944e-38, %v651_v24  ;;  %vm650_vm9 = vcmp.eq.f32.partialorder %v649_v30, 8.507059e+37 }
 0xce1   :  { %v1204_v25 = vpop.eup %1203 }
 0xce2   :  { %v641_v26 = vmul.f32 %v1204_v25, %v1440_v23  ;;  %vm646_vm6 = vweird.f32 %v1204_v25  ;;  %v1206_v45 = vpop.eup %1205 }
 0xce3   :  { %vm647_vm8 = vmor %vm645_vm7, %vm646_vm6  ;;  %v583_v46 = vadd.f32 1.0, %v1206_v45 }
 0xce4   :  { %v642_v28 = vsub.f32 1.0, %v641_v26 }
 0xce5   :  { %1207 = vrcp.f32 %v583_v46  ;;  %v595_v53 = vand.u32 2147483648, %v583_v46  ;;  %vm589_vm11 = vweird.f32 %v583_v46  ;;  %v593_v54 = vand.u32 2147483647, %v583_v46 }
 0xce6   :  { %v643_v29 = vmul.f32 %v1204_v25, %v642_v28 }
 0xce7   :  { %v596_v56 = vor.u32 1.1754944e-38, %v595_v53  ;;  %vm594_vm13 = vcmp.eq.f32.partialorder %v593_v54, 8.507059e+37 }
 0xce8   :  { %v644_v34 = vadd.f32 %v1204_v25, %v643_v29 }
 0xcea   :  { %v648_v39 = vsel %vm647_vm8, %v1204_v25, %v644_v34 }
 0xceb   :  { %v653_v41 = vsel %vm650_vm9, %v652_v35, %v648_v39  ;;  %v1208_v47 = vpop.eup %1207 }
 0xcec   :  { %v654_v42 = vmul.f32 %v653_v41, %v1448_v38  ;;  %v585_v48 = vmul.f32 %v1208_v47, %v583_v46  ;;  %vm590_vm10 = vweird.f32 %v1208_v47 }
 0xced   :  { %vm591_vm12 = vmor %vm589_vm11, %vm590_vm10 }
 0xcee   :  { %656 = vrot.lane.b32.xlu0 %v654_v42, %s1259_s26  ;;  %v586_v49 = vsub.f32 1.0, %v585_v48 }
 0xcf0   :  { %v587_v51 = vmul.f32 %v1208_v47, %v586_v49 }
 0xcf2   :  { %v588_v52 = vadd.f32 %v1208_v47, %v587_v51 }
 0xcf4   :  { %v592_v55 = vsel %vm591_vm12, %v1208_v47, %v588_v52 }
 0xcf5   :  { %v597_v57 = vsel %vm594_vm13, %v596_v56, %v592_v55 }
 0xd60   :  { %v657_v58 = vpop.permute.xlu0 %656 }
 0xd61   :  { %v659_v59 = vmul.f32 %v657_v58, %v597_v57 }
 0xd63   :  { %661 = vrot.lane.b32.xlu1 %v659_v59, %s1259_s26 }
 0xdd5   :  { %v662_v60 = vpop.permute.xlu1 %661 }
 0xdd6   :  { %1104 = vst.msk [vmem:[%s1662_s2 + $0x10] sm:$0xf] %vm18_vm0, %v662_v60  ;;  %1108 = vmatmul.msk.f32.vlgmr.msrb.gmra.mxu1 %vm32_vm1, %v662_v60 }
 0xe53   :  { %v703_v62 = vpop.f32.mrf.mxu1 }
 0xe54   :  { %v706_v63 = vadd.f32 %v1107_v61, %v703_v62 }
 0xe56   :  { %740 = vrot.lane.b32.xlu2 %v706_v63, %s1259_s26  ;;  %1209 = vtanh.f32 %v706_v63  ;;  %v728_v1 = vand.u32 2147483647, %v706_v63  ;;  %v727_v8 = vmin.f32 %v706_v63, 0.0  ;;  %v1109_v47 = vmul.f32 -1.442695, %v706_v63 }
 0xe58   :  { %v729_v2 = vsub.f32 0.0, %v728_v1 }
 0xe5a   :  { %v730_v3 = vmul.f32 1.442695, %v729_v2 }
 0xe5c   :  { %v1210_v0 = vpop.eup %1209  ;;  %1211 = vpow2.f32 %v730_v3 }
 0xe5d   :  { %753 = vrot.lane.b32.xlu1 %v1210_v0, %s1259_s26  ;;  %v1113_v0 = vld [vmem:[%s1661_s0 + $0x18] sm:$0xf] }
 0xe62   :  { %v1212_v4 = vpop.eup %1211 }
 0xe63   :  { %v732_v5 = vadd.f32 1.0, %v1212_v4 }
 0xe65   :  { %1213 = vlog2.f32 %v732_v5 }
 0xe6b   :  { %v1214_v6 = vpop.eup %1213 }
 0xe6c   :  { %v734_v7 = vmul.f32 0.6931472, %v1214_v6 }
 0xe6e   :  { %v735_v9 = vsub.f32 %v727_v8, %v734_v7 }
 0xe70   :  { %v738_v10 = vadd.f32 %v735_v9, %v1433_v11  ;;  %v736_v15 = vmul.f32 1.442695, %v735_v9 }
 0xeb0   :  { %v741_v13 = vpop.permute.xlu2 %740 }
 0xeb1   :  { %v1464_v14 = vmax.f32 %v738_v10, %v741_v13 }
 0xeb3   :  { %745 = vrot.lane.b32.xlu0 %v1464_v14, %s1260_s27 }
 0xecf   :  { %v754_v21 = vpop.permute.xlu1 %753 }
 0xf25   :  { %v746_v16 = vpop.permute.xlu0 %745 }
 0xf26   :  { %v748_v17 = vsub.f32 %v706_v63, %v746_v16 }
 0xf28   :  { %v749_v18 = vmul.f32 1.442695, %v748_v17 }
 0xf2a   :  { %1215 = vpow2.f32 %v749_v18 }
 0xf2b   :  { %1217 = vpow2.f32 %v736_v15 }
 0xf30   :  { %v1216_v19 = vpop.eup %1215 }
 0xf31   :  { %764 = vrot.lane.b32.xlu2 %v1216_v19, %s1259_s26  ;;  %v756_v12 = vmul.f32 %v1216_v19, %v754_v21  ;;  %v1218_v11 = vpop.eup %1217 }
 0xf32   :  { %v762_v22 = vmul.f32 %v1218_v11, %v1440_v23  ;;  %v751_v35 = vmul.f32 %v1218_v11, %v1448_v38 }
 0xf33   :  { %758 = vrot.lane.b32.xlu0 %v756_v12, %s1259_s26 }
 0xf8b   :  { %v765_v25 = vpop.permute.xlu2 %764 }
 0xf8c   :  { %v1471_v26 = vadd.f32 %v765_v25, %v762_v22 }
 0xf8e   :  { %1219 = vrcp.f32 %v1471_v26  ;;  %v779_v33 = vand.u32 2147483648, %v1471_v26  ;;  %vm773_vm15 = vweird.f32 %v1471_v26  ;;  %v777_v34 = vand.u32 2147483647, %v1471_v26 }
 0xf8f   :  { %1221 = vpow2.f32 %v1109_v47 }
 0xf90   :  { %v780_v42 = vor.u32 1.1754944e-38, %v779_v33  ;;  %vm778_vm3 = vcmp.eq.f32.partialorder %v777_v34, 8.507059e+37 }
 0xf94   :  { %v1220_v28 = vpop.eup %1219 }
 0xf95   :  { %v769_v24 = vmul.f32 %v1220_v28, %v1471_v26  ;;  %vm774_vm14 = vweird.f32 %v1220_v28  ;;  %v1222_v48 = vpop.eup %1221 }
 0xf96   :  { %vm775_vm2 = vmor %vm773_vm15, %vm774_vm14  ;;  %v711_v49 = vadd.f32 1.0, %v1222_v48 }
 0xf97   :  { %v770_v29 = vsub.f32 1.0, %v769_v24 }
 0xf98   :  { %1223 = vrcp.f32 %v711_v49  ;;  %v723_v56 = vand.u32 2147483648, %v711_v49  ;;  %vm717_vm5 = vweird.f32 %v711_v49  ;;  %v721_v57 = vand.u32 2147483647, %v711_v49 }
 0xf99   :  { %v771_v30 = vmul.f32 %v1220_v28, %v770_v29 }
 0xf9a   :  { %v724_v59 = vor.u32 1.1754944e-38, %v723_v56  ;;  %vm722_vm7 = vcmp.eq.f32.partialorder %v721_v57, 8.507059e+37  ;;  %v939_v56 = vld [vmem:[%s1660_s1 + $0x18] sm:$0xff]  ;;  %v938_v57 = vld [vmem:[%s1660_s1 + $0x10] sm:$0xff] }
 0xf9b   :  { %v772_v32 = vadd.f32 %v1220_v28, %v771_v30  ;;  %954 = vmatpush.msrb.mxu3 %v939_v56 }
 0xf9d   :  { %v776_v39 = vsel %vm775_vm2, %v1220_v28, %v772_v32  ;;  %955 = vmatpush.msrb.mxu3 %v938_v57 }
 0xf9e   :  { %v781_v45 = vsel %vm778_vm3, %v780_v42, %v776_v39  ;;  %v1224_v51 = vpop.eup %1223 }
 0xf9f   :  { %v713_v52 = vmul.f32 %v1224_v51, %v711_v49  ;;  %vm718_vm4 = vweird.f32 %v1224_v51 }
 0xfa0   :  { %vm719_vm6 = vmor %vm717_vm5, %vm718_vm4 }
 0xfa1   :  { %v714_v53 = vsub.f32 1.0, %v713_v52 }
 0xfa3   :  { %v715_v54 = vmul.f32 %v1224_v51, %v714_v53 }
 0xfa5   :  { %v759_v41 = vpop.permute.xlu0 %758  ;;  %v716_v55 = vadd.f32 %v1224_v51, %v715_v54 }
 0xfa6   :  { %v1479_v44 = vadd.f32 %v759_v41, %v751_v35 }
 0xfa7   :  { %v720_v58 = vsel %vm719_vm6, %v1224_v51, %v716_v55 }
 0xfa8   :  { %v782_v46 = vmul.f32 %v781_v45, %v1479_v44  ;;  %v725_v60 = vsel %vm722_vm7, %v724_v59, %v720_v58  ;;  %v937_v58 = vld [vmem:[%s1660_s1 + $0x8] sm:$0xff]  ;;  %v936_v59 = vld [vmem:[%s1660_s1] sm:$0xff] }
 0xfa9   :  { %956 = vmatpush.msrb.mxu3 %v937_v58 }
 0xfaa   :  { %784 = vrot.lane.b32.xlu1 %v782_v46, %s1259_s26 }
 0xfab   :  { %957 = vmatpush.msrb.mxu3 %v936_v59 }
0x101c   :  { %v785_v61 = vpop.permute.xlu1 %784 }
0x101d   :  { %v787_v62 = vmul.f32 %v785_v61, %v725_v60 }
0x101f   :  { %789 = vrot.lane.b32.xlu2 %v787_v62, %s1259_s26 }
0x1079   :  { %v790_v63 = vpop.permute.xlu2 %789 }
0x107a   :  { %1110 = vst.msk [vmem:[%s1662_s2 + $0x14] sm:$0xf] %vm18_vm0, %v790_v63  ;;  %1114 = vmatmul.msk.f32.vlgmr.msrb.gmra.mxu2 %vm32_vm1, %v790_v63 }
0x10fd   :  { %v831_v1 = vpop.f32.mrf.mxu2 }
0x10fe   :  { %v834_v2 = vadd.f32 %v1113_v0, %v831_v1 }
0x1100   :  { %868 = vrot.lane.b32.xlu0 %v834_v2, %s1259_s26  ;;  %1225 = vtanh.f32 %v834_v2  ;;  %v856_v4 = vand.u32 2147483647, %v834_v2  ;;  %v855_v13 = vmin.f32 %v834_v2, 0.0  ;;  %v1115_v53 = vmul.f32 -1.442695, %v834_v2 }
0x1102   :  { %v857_v5 = vsub.f32 0.0, %v856_v4 }
0x1104   :  { %v858_v6 = vmul.f32 1.442695, %v857_v5 }
0x1106   :  { %v1226_v3 = vpop.eup %1225  ;;  %1227 = vpow2.f32 %v858_v6 }
0x1107   :  { %881 = vrot.lane.b32.xlu2 %v1226_v3, %s1259_s26 }
0x110c   :  { %v1228_v7 = vpop.eup %1227 }
0x110d   :  { %v860_v8 = vadd.f32 1.0, %v1228_v7 }
0x110f   :  { %1229 = vlog2.f32 %v860_v8 }
0x1115   :  { %v1230_v9 = vpop.eup %1229 }
0x1116   :  { %v862_v10 = vmul.f32 0.6931472, %v1230_v9  ;;  %v1119_v9 = vld [vmem:[%s1661_s0 + $0x1c] sm:$0xf] }
0x1118   :  { %v863_v16 = vsub.f32 %v855_v13, %v862_v10 }
0x111a   :  { %v866_v17 = vadd.f32 %v863_v16, %v1464_v14  ;;  %v864_v28 = vmul.f32 1.442695, %v863_v16 }
0x1161   :  { %v882_v22 = vpop.permute.xlu2 %881 }
0x1172   :  { %v869_v18 = vpop.permute.xlu0 %868 }
0x1173   :  { %v1495_v19 = vmax.f32 %v866_v17, %v869_v18 }
0x1175   :  { %873 = vrot.lane.b32.xlu1 %v1495_v19, %s1260_s27 }
0x11e7   :  { %v874_v21 = vpop.permute.xlu1 %873 }
0x11e8   :  { %v876_v12 = vsub.f32 %v834_v2, %v874_v21 }
0x11ea   :  { %v877_v15 = vmul.f32 1.442695, %v876_v12 }
0x11ec   :  { %1231 = vpow2.f32 %v877_v15 }
0x11ed   :  { %1233 = vpow2.f32 %v864_v28 }
0x11f2   :  { %v1232_v11 = vpop.eup %1231 }
0x11f3   :  { %892 = vrot.lane.b32.xlu0 %v1232_v11, %s1259_s26  ;;  %v884_v25 = vmul.f32 %v1232_v11, %v882_v22  ;;  %v1234_v14 = vpop.eup %1233 }
0x11f4   :  { %v890_v24 = vmul.f32 %v1234_v14, %v1471_v26  ;;  %v879_v45 = vmul.f32 %v1234_v14, %v1479_v44 }
0x11f5   :  { %886 = vrot.lane.b32.xlu1 %v884_v25, %s1259_s26 }
0x1265   :  { %v893_v29 = vpop.permute.xlu0 %892 }
0x1266   :  { %v1502_v30 = vadd.f32 %v893_v29, %v890_v24 }
0x1267   :  { %v887_v42 = vpop.permute.xlu1 %886 }
0x1268   :  { %1235 = vrcp.f32 %v1502_v30  ;;  %v907_v35 = vand.u32 2147483648, %v1502_v30  ;;  %v905_v41 = vand.u32 2147483647, %v1502_v30  ;;  %vm901_vm9 = vweird.f32 %v1502_v30 }
0x1269   :  { %v1510_v48 = vadd.f32 %v887_v42, %v879_v45  ;;  %1237 = vpow2.f32 %v1115_v53 }
0x126a   :  { %v908_v47 = vor.u32 1.1754944e-38, %v907_v35  ;;  %vm906_vm11 = vcmp.eq.f32.partialorder %v905_v41, 8.507059e+37 }
0x126e   :  { %v1236_v32 = vpop.eup %1235 }
0x126f   :  { %v897_v33 = vmul.f32 %v1236_v32, %v1502_v30  ;;  %vm902_vm8 = vweird.f32 %v1236_v32  ;;  %v1238_v54 = vpop.eup %1237 }
0x1270   :  { %vm903_vm10 = vmor %vm901_vm9, %vm902_vm8  ;;  %v839_v55 = vadd.f32 1.0, %v1238_v54 }
0x1271   :  { %v898_v34 = vsub.f32 1.0, %v897_v33 }
0x1272   :  { %1239 = vrcp.f32 %v839_v55  ;;  %v851_v1 = vand.u32 2147483648, %v839_v55  ;;  %vm845_vm13 = vweird.f32 %v839_v55  ;;  %v849_v2 = vand.u32 2147483647, %v839_v55 }
0x1273   :  { %v899_v39 = vmul.f32 %v1236_v32, %v898_v34 }
0x1274   :  { %v852_v4 = vor.u32 1.1754944e-38, %v851_v1  ;;  %vm850_vm15 = vcmp.eq.f32.partialorder %v849_v2, 8.507059e+37 }
0x1275   :  { %v900_v46 = vadd.f32 %v1236_v32, %v899_v39 }
0x1277   :  { %v904_v49 = vsel %vm903_vm10, %v1236_v32, %v900_v46 }
0x1278   :  { %v909_v51 = vsel %vm906_vm11, %v908_v47, %v904_v49  ;;  %v1240_v60 = vpop.eup %1239 }
0x1279   :  { %v910_v52 = vmul.f32 %v909_v51, %v1510_v48  ;;  %v841_v61 = vmul.f32 %v1240_v60, %v839_v55  ;;  %vm846_vm12 = vweird.f32 %v1240_v60 }
0x127a   :  { %vm847_vm14 = vmor %vm845_vm13, %vm846_vm12 }
0x127b   :  { %912 = vrot.lane.b32.xlu2 %v910_v52, %s1259_s26  ;;  %v842_v62 = vsub.f32 1.0, %v841_v61 }
0x127d   :  { %v843_v63 = vmul.f32 %v1240_v60, %v842_v62 }
0x127f   :  { %v844_v0 = vadd.f32 %v1240_v60, %v843_v63 }
0x1281   :  { %v848_v3 = vsel %vm847_vm14, %v1240_v60, %v844_v0 }
0x1282   :  { %v853_v5 = vsel %vm850_vm15, %v852_v4, %v848_v3 }
0x12d5   :  { %v913_v6 = vpop.permute.xlu2 %912 }
0x12d6   :  { %v915_v7 = vmul.f32 %v913_v6, %v853_v5 }
0x12d8   :  { %917 = vrot.lane.b32.xlu0 %v915_v7, %s1259_s26 }
0x134a   :  { %v918_v8 = vpop.permute.xlu0 %917 }
0x134b   :  { %1116 = vst.msk [vmem:[%s1662_s2 + $0x18] sm:$0xf] %vm18_vm0, %v918_v8  ;;  %1120 = vmatmul.msk.f32.vlgmr.msrb.gmra.mxu3 %vm32_vm1, %v918_v8 }
0x13ce   :  { %v959_v10 = vpop.f32.mrf.mxu3 }
0x13cf   :  { %v1535_v13 = vadd.f32 %v1119_v9, %v959_v10 }
0x13d1   :  { %996 = vrot.lane.b32.xlu1 %v1535_v13, %s1259_s26  ;;  %1241 = vtanh.f32 %v1535_v13  ;;  %v984_v17 = vand.u32 2147483647, %v1535_v13  ;;  %v983_v25 = vmin.f32 %v1535_v13, 0.0 }
0x13d3   :  { %v985_v18 = vsub.f32 0.0, %v984_v17 }
0x13d5   :  { %v986_v21 = vmul.f32 1.442695, %v985_v18 }
0x13d7   :  { %v1242_v16 = vpop.eup %1241  ;;  %1243 = vpow2.f32 %v986_v21 }
0x13d8   :  { %1009 = vrot.lane.b32.xlu0 %v1242_v16, %s1259_s26 }
0x13dd   :  { %v1244_v12 = vpop.eup %1243 }
0x13de   :  { %v988_v15 = vadd.f32 1.0, %v1244_v12 }
0x13e0   :  { %1245 = vlog2.f32 %v988_v15 }
0x13e6   :  { %v1246_v11 = vpop.eup %1245 }
0x13e7   :  { %v990_v22 = vmul.f32 0.6931472, %v1246_v11 }
0x13e9   :  { %v991_v28 = vsub.f32 %v983_v25, %v990_v22 }
0x13eb   :  { %v994_v14 = vadd.f32 %v991_v28, %v1495_v19 }
0x1443   :  { %v997_v24 = vpop.permute.xlu1 %996 }
0x1444   :  { %v1544_v29 = vmax.f32 %v994_v14, %v997_v24 }
0x1446   :  { %1001 = vrot.lane.b32.xlu2 %v1544_v29, %s1260_s27 }
0x144a   :  { %v1010_v39 = vpop.permute.xlu0 %1009 }
0x14a0   :  { %v1002_v32 = vpop.permute.xlu2 %1001 }
0x14a1   :  { %v1004_v33 = vsub.f32 %v1535_v13, %v1002_v32 }
0x14a3   :  { %v1005_v34 = vmul.f32 1.442695, %v1004_v33 }
0x14a5   :  { %1247 = vpow2.f32 %v1005_v34 }
0x14ab   :  { %v1248_v35 = vpop.eup %1247 }
0x14ac   :  { %1020 = vrot.lane.b32.xlu1 %v1248_v35, %s1259_s26  ;;  %v1012_v41 = vmul.f32 %v1248_v35, %v1010_v39 }
0x14ae   :  { %1014 = vrot.lane.b32.xlu2 %v1012_v41, %s1259_s26 }
0x14b4   :  { %157 = vrot.lane.b32.xlu1 %v1324_v50, %s1258_s23 }
0x14b6   :  { %162 = vrot.lane.b32.xlu2 %v1317_v37, %s1258_s23  ;;  %v992_v37 = vmul.f32 1.442695, %v991_v28 }
0x14b8   :  { %1249 = vpow2.f32 %v992_v37 }
0x14bc   :  { %289 = vrot.lane.b32.xlu1 %v1347_v31, %s1258_s23 }
0x14be   :  { %411 = vrot.lane.b32.xlu2 %v1386_v40, %s1258_s23  ;;  %v1250_v50 = vpop.eup %1249 }
0x14bf   :  { %v1007_v31 = vmul.f32 %v1250_v50, %v1510_v48 }
0x14c4   :  { %539 = vrot.lane.b32.xlu1 %v1417_v36, %s1258_s23 }
0x14c6   :  { %545 = vrot.lane.b32.xlu2 %v1409_v20, %s1258_s23 }
0x14cc   :  { %673 = vrot.lane.b32.xlu1 %v1440_v23, %s1258_s23 }
0x14ce   :  { %795 = vrot.lane.b32.xlu2 %v1479_v44, %s1258_s23  ;;  %v1018_v44 = vmul.f32 %v1250_v50, %v1502_v30 }
0x14d4   :  { %923 = vrot.lane.b32.xlu1 %v1510_v48, %s1258_s23 }
0x14d6   :  { %929 = vrot.lane.b32.xlu2 %v1502_v30, %s1258_s23 }
0x1508   :  { %v1015_v40 = vpop.permute.xlu2 %1014 }
0x1509   :  { %v1017_v36 = vadd.f32 %v1015_v40, %v1007_v31 }
0x150b   :  { %1051 = vrot.lane.b32.xlu1 %v1017_v36, %s1258_s23 }
0x1510   :  { %v163_v20 = vpop.permute.xlu2 %162 }
0x1511   :  { %165 = vst.msk [vmem:[%s1663_s4] sm:$0xf] %vm18_vm0, %v163_v20 }
0x1518   :  { %v412_v23 = vpop.permute.xlu2 %411 }
0x1519   :  { %1093 = vst.msk [vmem:[%s1664_s3 + $0x8] sm:$0xf] %vm18_vm0, %v412_v23 }
0x151e   :  { %v1021_v19 = vpop.permute.xlu1 %1020 }
0x151f   :  { %v1023_v42 = vadd.f32 %v1021_v19, %v1018_v44 }
0x1520   :  { %v546_v45 = vpop.permute.xlu2 %545 }
0x1521   :  { %1251 = vrcp.f32 %v1023_v42  ;;  %1100 = vst.msk [vmem:[%s1663_s4 + $0xc] sm:$0xf] %vm18_vm0, %v546_v45  ;;  %1057 = vrot.lane.b32.xlu2 %v1023_v42, %s1258_s23  ;;  %v1035_v51 = vand.u32 2147483648, %v1023_v42  ;;  %v1033_v53 = vand.u32 2147483647, %v1023_v42  ;;  %vm1029_vm2 = vweird.f32 %v1023_v42 }
0x1523   :  { %v1036_v56 = vor.u32 1.1754944e-38, %v1035_v51  ;;  %vm1034_vm4 = vcmp.eq.f32.partialorder %v1033_v53, 8.507059e+37 }
0x1526   :  { %v158_v46 = vpop.permute.xlu1 %157 }
0x1527   :  { %v1252_v47 = vpop.eup %1251  ;;  %160 = vst.msk [vmem:[%s1664_s3] sm:$0xf] %vm18_vm0, %v158_v46 }
0x1528   :  { %v796_v48 = vpop.permute.xlu2 %795  ;;  %v1025_v30 = vmul.f32 %v1252_v47, %v1023_v42  ;;  %vm1030_vm1 = vweird.f32 %v1252_v47 }
0x1529   :  { %1111 = vst.msk [vmem:[%s1664_s3 + $0x14] sm:$0xf] %vm18_vm0, %v796_v48  ;;  %vm1031_vm3 = vmor %vm1029_vm2, %vm1030_vm1 }
0x152a   :  { %v1026_v49 = vsub.f32 1.0, %v1025_v30 }
0x152c   :  { %v1027_v52 = vmul.f32 %v1252_v47, %v1026_v49 }
0x152e   :  { %v290_v54 = vpop.permute.xlu1 %289  ;;  %v1028_v55 = vadd.f32 %v1252_v47, %v1027_v52 }
0x152f   :  { %1088 = vst.msk [vmem:[%s1663_s4 + $0x4] sm:$0xf] %vm18_vm0, %v290_v54 }
0x1530   :  { %v930_v57 = vpop.permute.xlu2 %929  ;;  %v1032_v58 = vsel %vm1031_vm3, %v1252_v47, %v1028_v55 }
0x1531   :  { %1118 = vst.msk [vmem:[%s1663_s4 + $0x18] sm:$0xf] %vm18_vm0, %v930_v57  ;;  %v1037_v59 = vsel %vm1034_vm4, %v1036_v56, %v1032_v58 }
0x1532   :  { %v1038_v60 = vmul.f32 %v1037_v59, %v1017_v36 }
0x1534   :  { %1040 = vrot.lane.b32.xlu0 %v1038_v60, %s1259_s26 }
0x1536   :  { %v540_v61 = vpop.permute.xlu1 %539 }
0x1537   :  { %1099 = vst.msk [vmem:[%s1664_s3 + $0xc] sm:$0xf] %vm18_vm0, %v540_v61 }
0x153c   :  { %283 = vrot.lane.b32.xlu0 %v1355_v43, %s1258_s23  ;;  %v1121_v43 = vmul.f32 -1.442695, %v1535_v13 }
0x153e   :  { %v674_v62 = vpop.permute.xlu1 %673  ;;  %1253 = vpow2.f32 %v1121_v43 }
0x153f   :  { %1106 = vst.msk [vmem:[%s1663_s4 + $0x10] sm:$0xf] %vm18_vm0, %v674_v62 }
0x1544   :  { %417 = vrot.lane.b32.xlu0 %v1378_v27, %s1258_s23 }
0x1546   :  { %v924_v63 = vpop.permute.xlu1 %923 }
0x1547   :  { %1117 = vst.msk [vmem:[%s1664_s3 + $0x18] sm:$0xf] %vm18_vm0, %v924_v63 }
0x154c   :  { %667 = vrot.lane.b32.xlu0 %v1448_v38, %s1258_s23  ;;  %v1254_v38 = vpop.eup %1253 }
0x1554   :  { %801 = vrot.lane.b32.xlu0 %v1471_v26, %s1258_s23  ;;  %v967_v26 = vadd.f32 1.0, %v1254_v38 }
0x1556   :  { %1255 = vrcp.f32 %v967_v26  ;;  %v979_v6 = vand.u32 2147483648, %v967_v26  ;;  %vm973_vm6 = vweird.f32 %v967_v26  ;;  %v977_v7 = vand.u32 2147483647, %v967_v26 }
0x1558   :  { %v980_v9 = vor.u32 1.1754944e-38, %v979_v6  ;;  %vm978_vm8 = vcmp.eq.f32.partialorder %v977_v7, 8.507059e+37 }
0x155c   :  { %v1256_v1 = vpop.eup %1255 }
0x155d   :  { %v969_v2 = vmul.f32 %v1256_v1, %v967_v26  ;;  %vm974_vm5 = vweird.f32 %v1256_v1 }
0x155e   :  { %vm975_vm7 = vmor %vm973_vm6, %vm974_vm5 }
0x155f   :  { %v970_v3 = vsub.f32 1.0, %v969_v2 }
0x1561   :  { %v971_v4 = vmul.f32 %v1256_v1, %v970_v3 }
0x1563   :  { %v972_v5 = vadd.f32 %v1256_v1, %v971_v4 }
0x1565   :  { %v976_v8 = vsel %vm975_vm7, %v1256_v1, %v972_v5 }
0x1566   :  { %v981_v10 = vsel %vm978_vm8, %v980_v9, %v976_v8 }
0x157b   :  { %v1058_v0 = vpop.permute.xlu2 %1057 }
0x157c   :  { %1124 = vst.msk [vmem:[%s1663_s4 + $0x1c] sm:$0xf] %vm18_vm0, %v1058_v0 }
0x157d   :  { %1064 = vst.msk [vmem:[#allocation4] sm:$0xf] %vm18_vm0, %v1058_v0  ;;  %v1052_v27 = vpop.permute.xlu1 %1051 }
0x157e   :  { %1123 = vst.msk [vmem:[%s1664_s3 + $0x1c] sm:$0xf] %vm18_vm0, %v1052_v27 }
0x157f   :  { %1063 = vst.msk [vmem:[#allocation3] sm:$0xf] %vm18_vm0, %v1052_v27 }
0x15a6   :  { %v1041_v13 = vpop.permute.xlu0 %1040 }
0x15a7   :  { %v1043_v16 = vmul.f32 %v1041_v13, %v981_v10 }
0x15a9   :  { %1045 = vrot.lane.b32.xlu0 %v1043_v16, %s1259_s26 }
0x15ae   :  { %v284_v17 = vpop.permute.xlu0 %283 }
0x15af   :  { %1087 = vst.msk [vmem:[%s1664_s3 + $0x4] sm:$0xf] %vm18_vm0, %v284_v17 }
0x15b1   :  { %1065 = vrot.lane.b32.xlu0 %v1544_v29, %s1258_s23 }
0x15b6   :  { %v418_v18 = vpop.permute.xlu0 %417 }
0x15b7   :  { %1094 = vst.msk [vmem:[%s1663_s4 + $0x8] sm:$0xf] %vm18_vm0, %v418_v18 }
0x15be   :  { %v668_v21 = vpop.permute.xlu0 %667 }
0x15bf   :  { %1105 = vst.msk [vmem:[%s1664_s3 + $0x10] sm:$0xf] %vm18_vm0, %v668_v21 }
0x15c6   :  { %v802_v12 = vpop.permute.xlu0 %801 }
0x15c7   :  { %1112 = vst.msk [vmem:[%s1663_s4 + $0x14] sm:$0xf] %vm18_vm0, %v802_v12 }
0x161b   :  { %v1046_v15 = vpop.permute.xlu0 %1045 }
0x161c   :  { %1122 = vst.msk [vmem:[%s1662_s2 + $0x1c] sm:$0xf] %vm18_vm0, %v1046_v15 }
0x161d   :  { %1062 = vst.msk [vmem:[#allocation2] sm:$0xf] %vm18_vm0, %v1046_v15 }
0x1623   :  { %v1066_v11 = vpop.permute.xlu0 %1065 }
0x1624   :  { %1068 = vst.msk [vmem:[#allocation5] sm:$0xf] %vm18_vm0, %v1066_v11 }

</bundles_post_ra>
